<compile_context>
chip_gen: v7x
topology: tpu7x:2x2x1
jax: 0.10.0
libtpu: 0.0.40
codegen_flags: <defaults>
</compile_context>

<pallas_src>
import functools

import jax
import jax.numpy as jnp
from jax.experimental import pallas as pl
from jax.experimental.pallas import tpu as pltpu

# ----------------------------- model config (small synthetic) --------------------
B = 2                    # batch
IMG = 16                 # image height/width
C = 3                    # channels
P = 4                    # patch size           (real model: 14)
D = 32                   # embed dim            (real model: 384)
NH = 2                   # heads                (real model: 6)
DH = D // NH             # head dim
DEPTH = 2                # transformer blocks   (real model: 12)
MLP = 4 * D              # mlp hidden
REG = 4                  # num_register_tokens
NP = (IMG // P) ** 2     # number of patches
NPRE = 1 + REG           # cls + register tokens
S = NPRE + NP            # sequence length
HIDDEN = 32              # classifier hidden_size
NCLS = 10                # num_classes
NCLS_PAD = 128           # lane-dense classifier output width (sliced to NCLS in glue)
OUT_ROWS = 8             # sublane-dense logits block (row 0 is the real result)
PPC = P * P * C          # flattened patch size
LN_EPS = 1e-6            # DINOv2 uses nn.LayerNorm(eps=1e-6)


# ----------------------------- in-kernel math helpers ----------------------------
def _ln(x, g, b, eps):
    mu = jnp.mean(x, axis=-1, keepdims=True)
    var = jnp.mean((x - mu) ** 2, axis=-1, keepdims=True)
    return (x - mu) * jax.lax.rsqrt(var + eps) * g + b


def _gelu(x):
    # TODO(synk): torch.nn.GELU() default is erf-exact; tanh approximation used here
    # (max abs deviation ~1e-3) to stay on guaranteed-lowerable transcendentals.
    c = 0.7978845608028654  # sqrt(2/pi)
    return 0.5 * x * (1.0 + jnp.tanh(c * (x + 0.044715 * x * x * x)))


# ----------------------------- BlockSpec helpers ----------------------------------
def _const_spec(shape):
    """Grid-invariant full-array block."""
    zeros = (0,) * len(shape)
    return pl.BlockSpec(shape, lambda i, l, _z=zeros: _z)


def _layer_spec(shape):
    """Stacked-per-layer block: leading DEPTH dim squeezed, indexed by depth coord."""
    block = (None,) + tuple(shape[1:])
    tail = (0,) * (len(shape) - 1)
    return pl.BlockSpec(block, lambda i, l, _t=tail: (l,) + _t)


# ----------------------------- the fused kernel -----------------------------------
def _dino_kernel(patches_ref,                         # (NP, PPC)      f32  per-batch
                 patch_w_ref,                         # (PPC, D)       bf16
                 pos_bias_ref,                        # (NP, D)        f32  pos + conv bias
                 prefix_ref,                          # (NPRE, D)      f32  [cls+pos0, registers]
                 vecs_ref,                            # (8, D)         f32  per-layer vectors
                 wqkv_ref,                            # (3, NH, D, DH) bf16 per-layer (scale folded into q)
                 bqkv_ref,                            # (3, NH, 1, DH) f32  per-layer
                 projw_ref,                           # (NH, DH, D)    bf16 per-layer
                 fc1w_ref,                            # (D, MLP)       bf16 per-layer
                 fc1b_ref,                            # (1, MLP)       f32  per-layer
                 fc2w_ref,                            # (MLP, D)       bf16 per-layer
                 norm_g_ref, norm_b_ref,              # (1, D)         f32
                 c1w_ref, c1b_ref,                    # (D, HIDDEN) bf16 / (1, HIDDEN) f32
                 c2w_ref, c2b_ref,                    # (HIDDEN, NCLS_PAD) bf16 / (1, NCLS_PAD) f32
                 out_ref,                             # (OUT_ROWS, NCLS_PAD) f32
                 acc_ref,                             # VMEM scratch (S, D) f32 — resident activation
                 *, nh, eps, depth, n_prefix):
    l = pl.program_id(1)

    # ---- depth step 0: fused patch embed + sequence assembly into resident VMEM ----
    @pl.when(l == 0)
    def _():
        tok = jnp.dot(patches_ref[...].astype(jnp.bfloat16), patch_w_ref[...],
                      preferred_element_type=jnp.float32) + pos_bias_ref[...]
        acc_ref[0:n_prefix, :] = prefix_ref[...]      # cls (+pos) and register tokens
        acc_ref[n_prefix:, :] = tok                   # patch tokens (+pos, +conv bias)

    # ---- one pre-norm transformer block (with LayerScale) for layer l ----
    vec = vecs_ref[...]                               # (8, D): packed per-layer vectors
    n1g, n1b = vec[0:1], vec[1:2]
    projb, ls1 = vec[2:3], vec[3:4]
    n2g, n2b = vec[4:5], vec[5:6]
    fc2b, ls2 = vec[6:7], vec[7:8]

    x = acc_ref[...]                                  # (S, D) f32

    # attention branch: LN -> per-head qkv -> softmax attn -> accumulate into proj
    h = _ln(x, n1g, n1b, eps).astype(jnp.bfloat16)
    attn = jnp.zeros_like(x)
    for hh in range(nh):                              # static unroll
        q = jnp.dot(h, wqkv_ref[0, hh], preferred_element_type=jnp.float32) + bqkv_ref[0, hh]
        k = jnp.dot(h, wqkv_ref[1, hh], preferred_element_type=jnp.float32) + bqkv_ref[1, hh]
        v = jnp.dot(h, wqkv_ref[2, hh], preferred_element_type=jnp.float32) + bqkv_ref[2, hh]
        # q @ k^T without materializing a transpose: contract last axes.
        s = jax.lax.dot_general(q.astype(jnp.bfloat16), k.astype(jnp.bfloat16),
                                (((1,), (1,)), ((), ())),
                                preferred_element_type=jnp.float32)        # (S, S)
        s = s - jnp.max(s, axis=-1, keepdims=True)
        p = jnp.exp(s)
        p = p * pl.reciprocal(jnp.sum(p, axis=-1, keepdims=True), approx=True)  # EUP, ~free
        o = jnp.dot(p.astype(jnp.bfloat16), v.astype(jnp.bfloat16),
                    preferred_element_type=jnp.float32)                    # (S, DH)
        # per-head accumulation directly into the projection (no lane concatenate)
        attn = attn + jnp.dot(o.astype(jnp.bfloat16), projw_ref[hh],
                              preferred_element_type=jnp.float32)          # (S, D)
    x1 = x + (attn + projb) * ls1                     # LayerScale + residual

    # MLP branch: LN -> fc1 + GELU -> fc2 -> LayerScale + residual
    h2 = _ln(x1, n2g, n2b, eps).astype(jnp.bfloat16)
    m = jnp.dot(h2, fc1w_ref[...], preferred_element_type=jnp.float32) + fc1b_ref[...]
    m = _gelu(m).astype(jnp.bfloat16)
    m = jnp.dot(m, fc2w_ref[...], preferred_element_type=jnp.float32) + fc2b
    x2 = x1 + m * ls2
    acc_ref[...] = x2                                 # activation stays resident across depth

    # ---- last depth step: backbone norm (+ module's second norm) + classifier ----
    @pl.when(l == depth - 1)
    def _():
        c = x2[0:1, :]                                # cls token
        # transformers(inputs) returns the NORMED cls token, then the module applies
        # transformers.norm AGAIN before the classifier -> double LayerNorm, per spec.
        c = _ln(c, norm_g_ref[...], norm_b_ref[...], eps)
        c = _ln(c, norm_g_ref[...], norm_b_ref[...], eps)
        hc = jnp.dot(c.astype(jnp.bfloat16), c1w_ref[...],
                     preferred_element_type=jnp.float32) + c1b_ref[...]
        hc = jnp.maximum(hc, 0.0)
        logits = jnp.dot(hc.astype(jnp.bfloat16), c2w_ref[...],
                         preferred_element_type=jnp.float32) + c2b_ref[...]  # (1, NCLS_PAD)
        out_ref[...] = jnp.broadcast_to(logits, (OUT_ROWS, NCLS_PAD))


# ----------------------------- forward pass (glue + single pallas_call) -----------
def forward(params, x):
    """x: (B, IMG, IMG, C) NHWC -> logits (B, NCLS)."""
    Bb, Hh, Ww, Cc = x.shape
    hp, wp = Hh // P, Ww // P

    # im2col for the Conv2d(kernel=stride=P) patch embedding (pure layout glue).
    patches = (x.reshape(Bb, hp, P, wp, P, Cc)
                 .transpose(0, 1, 3, 2, 4, 5)
                 .reshape(Bb, hp * wp, PPC))

    kern = functools.partial(_dino_kernel, nh=NH, eps=LN_EPS,
                             depth=DEPTH, n_prefix=NPRE)

    out = pl.pallas_call(
        kern,
        out_shape=jax.ShapeDtypeStruct((Bb, OUT_ROWS, NCLS_PAD), jnp.float32),
        grid=(Bb, DEPTH),
        in_specs=[
            pl.BlockSpec((None, NP, PPC), lambda i, l: (i, 0, 0)),   # patches (per batch)
            _const_spec((PPC, D)),                                   # patch_w
            _const_spec((NP, D)),                                    # pos_bias
            _const_spec((NPRE, D)),                                  # prefix tokens
            _layer_spec((DEPTH, 8, D)),                              # packed LN/LS/bias vectors
            _layer_spec((DEPTH, 3, NH, D, DH)),                      # qkv weights (per head)
            _layer_spec((DEPTH, 3, NH, 1, DH)),                      # qkv biases
            _layer_spec((DEPTH, NH, DH, D)),                         # proj weights (per head)
            _layer_spec((DEPTH, D, MLP)),                            # fc1 w
            _layer_spec((DEPTH, 1, MLP)),                            # fc1 b
            _layer_spec((DEPTH, MLP, D)),                            # fc2 w
            _const_spec((1, D)), _const_spec((1, D)),                # final norm gamma/beta
            _const_spec((D, HIDDEN)), _const_spec((1, HIDDEN)),      # classifier fc1
            _const_spec((HIDDEN, NCLS_PAD)), _const_spec((1, NCLS_PAD)),  # classifier fc2 (padded)
        ],
        out_specs=pl.BlockSpec((None, OUT_ROWS, NCLS_PAD), lambda i, l: (i, 0, 0)),
        scratch_shapes=[pltpu.VMEM((S, D), jnp.float32)],
        compiler_params=pltpu.CompilerParams(
            dimension_semantics=("parallel", "arbitrary")),
    )(patches,
      params["patch_w"], params["pos_bias"], params["prefix"],
      params["vecs"], params["wqkv"], params["bqkv"], params["projw"],
      params["fc1w"], params["fc1b"], params["fc2w"],
      params["norm_g"], params["norm_b"],
      params["c1w"], params["c1b"], params["c2w"], params["c2b"])

    return out[:, 0, :NCLS]


# ----------------------------- deterministic parameter init ----------------------
def init_params(key):
    keys = iter(jax.random.split(key, 64))

    def nrm(shape, scale=0.02):
        return scale * jax.random.normal(next(keys), shape, dtype=jnp.float32)

    scale = DH ** -0.5
    bf16 = jnp.bfloat16

    # Per-layer stacked weights (head-split layouts; attention scale folded into q).
    wqkv = nrm((DEPTH, 3, NH, D, DH))
    wqkv = wqkv.at[:, 0].multiply(scale)                    # fold 1/sqrt(DH) into q weights
    bqkv = jnp.zeros((DEPTH, 3, NH, 1, DH), jnp.float32)    # (scale-fold on zero q-bias is a no-op)
    projw = nrm((DEPTH, NH, DH, D))
    fc1w = nrm((DEPTH, D, MLP))
    fc1b = jnp.zeros((DEPTH, 1, MLP), jnp.float32)
    fc2w = nrm((DEPTH, MLP, D))

    # Packed per-layer vectors: rows = [n1g, n1b, projb, ls1, n2g, n2b, fc2b, ls2]
    ones = jnp.ones((DEPTH, 1, D), jnp.float32)
    zeros = jnp.zeros((DEPTH, 1, D), jnp.float32)
    vecs = jnp.concatenate(
        [ones, zeros, zeros, ones, ones, zeros, zeros, ones], axis=1)   # LayerScale init=1.0

    # Patch embed + tokens.
    patch_w = nrm((PPC, D))
    patch_b = jnp.zeros((D,), jnp.float32)
    cls_token = nrm((1, D))
    reg_tokens = nrm((REG, D))
    pos_embed = nrm((1 + NP, D))
    prefix = jnp.concatenate([cls_token + pos_embed[:1], reg_tokens], axis=0)   # (NPRE, D)
    pos_bias = pos_embed[1:] + patch_b[None, :]                                 # (NP, D)

    # Head: backbone final norm + classifier.  Final linear stored lane-padded to 128
    # (zero columns) so the in-kernel logits store is lane-dense; sliced to NCLS in glue.
    norm_g = jnp.ones((1, D), jnp.float32)
    norm_b = jnp.zeros((1, D), jnp.float32)
    c1w = nrm((D, HIDDEN))
    c1b = jnp.zeros((1, HIDDEN), jnp.float32)
    c2w = jnp.zeros((HIDDEN, NCLS_PAD), jnp.float32).at[:, :NCLS].set(nrm((HIDDEN, NCLS)))
    c2b = jnp.zeros((1, NCLS_PAD), jnp.float32)

    return dict(
        patch_w=patch_w.astype(bf16), pos_bias=pos_bias, prefix=prefix,
        vecs=vecs,
        wqkv=wqkv.astype(bf16), bqkv=bqkv, projw=projw.astype(bf16),
        fc1w=fc1w.astype(bf16), fc1b=fc1b, fc2w=fc2w.astype(bf16),
        norm_g=norm_g, norm_b=norm_b,
        c1w=c1w.astype(bf16), c1b=c1b, c2w=c2w.astype(bf16), c2b=c2b,
    )


# ----------------------------- main ----------------------------------------------
if __name__ == "__main__":
    root = jax.random.PRNGKey(0)
    k_param, k_x = jax.random.split(root)
    params = init_params(k_param)
    x = jax.random.normal(k_x, (B, IMG, IMG, C), dtype=jnp.float32)

    logits = jax.jit(forward)(params, x)
    logits = jax.block_until_ready(logits)

    assert logits.shape == (B, NCLS), logits.shape
    assert bool(jnp.all(jnp.isfinite(logits)))
    print("KERNEL_OK")
</pallas_src>

<mosaic_0001>
module attributes {stable_mosaic.version = 11 : i64} {
  func.func @_dino_kernel(%arg0: i32, %arg1: i32, %arg2: memref<1x16x48xf32, #tpu.memory_space<vmem>>, %arg3: memref<48x32xbf16, #tpu.memory_space<vmem>>, %arg4: memref<16x32xf32, #tpu.memory_space<vmem>>, %arg5: memref<5x32xf32, #tpu.memory_space<vmem>>, %arg6: memref<1x8x32xf32, #tpu.memory_space<vmem>>, %arg7: memref<1x3x2x32x16xbf16, #tpu.memory_space<vmem>>, %arg8: memref<1x3x2x1x16xf32, #tpu.memory_space<vmem>>, %arg9: memref<1x2x16x32xbf16, #tpu.memory_space<vmem>>, %arg10: memref<1x32x128xbf16, #tpu.memory_space<vmem>>, %arg11: memref<1x1x128xf32, #tpu.memory_space<vmem>>, %arg12: memref<1x128x32xbf16, #tpu.memory_space<vmem>>, %arg13: memref<1x32xf32, #tpu.memory_space<vmem>>, %arg14: memref<1x32xf32, #tpu.memory_space<vmem>>, %arg15: memref<32x32xbf16, #tpu.memory_space<vmem>>, %arg16: memref<1x32xf32, #tpu.memory_space<vmem>>, %arg17: memref<32x128xbf16, #tpu.memory_space<vmem>>, %arg18: memref<1x128xf32, #tpu.memory_space<vmem>>, %arg19: memref<1x8x128xf32, #tpu.memory_space<vmem>>, %arg20: memref<21x32xf32, #tpu.memory_space<vmem>>) attributes {dimension_semantics = [#tpu.dimension_semantics<parallel>, #tpu.dimension_semantics<arbitrary>], iteration_bounds = array<i64: 2, 2>, scalar_prefetch = 0 : i64, scratch_operands = 1 : i64, tpu.core_type = #tpu.core_type<tc>, window_params = [{transform_indices = @transform_0, window_bounds = array<i64: 1, 16, 48>}, {pipeline_mode = #tpu.pipeline_mode<synchronous>, transform_indices = @transform_1, window_bounds = array<i64: 48, 32>}, {pipeline_mode = #tpu.pipeline_mode<synchronous>, transform_indices = @transform_2, window_bounds = array<i64: 16, 32>}, {pipeline_mode = #tpu.pipeline_mode<synchronous>, transform_indices = @transform_3, window_bounds = array<i64: 5, 32>}, {transform_indices = @transform_4, window_bounds = array<i64: 1, 8, 32>}, {transform_indices = @transform_5, window_bounds = array<i64: 1, 3, 2, 32, 16>}, {transform_indices = @transform_6, window_bounds = array<i64: 1, 3, 2, 1, 16>}, {transform_indices = @transform_7, window_bounds = array<i64: 1, 2, 16, 32>}, {transform_indices = @transform_8, window_bounds = array<i64: 1, 32, 128>}, {transform_indices = @transform_9, window_bounds = array<i64: 1, 1, 128>}, {transform_indices = @transform_10, window_bounds = array<i64: 1, 128, 32>}, {pipeline_mode = #tpu.pipeline_mode<synchronous>, transform_indices = @transform_11, window_bounds = array<i64: 1, 32>}, {pipeline_mode = #tpu.pipeline_mode<synchronous>, transform_indices = @transform_12, window_bounds = array<i64: 1, 32>}, {pipeline_mode = #tpu.pipeline_mode<synchronous>, transform_indices = @transform_13, window_bounds = array<i64: 32, 32>}, {pipeline_mode = #tpu.pipeline_mode<synchronous>, transform_indices = @transform_14, window_bounds = array<i64: 1, 32>}, {pipeline_mode = #tpu.pipeline_mode<synchronous>, transform_indices = @transform_15, window_bounds = array<i64: 32, 128>}, {pipeline_mode = #tpu.pipeline_mode<synchronous>, transform_indices = @transform_16, window_bounds = array<i64: 1, 128>}, {transform_indices = @transform_17, window_bounds = array<i64: 1, 8, 128>}]} {
    %c0_i32 = arith.constant 0 : i32
    %0 = arith.cmpi eq, %arg1, %c0_i32 : i32
    %1 = arith.extui %0 : i1 to i32
    %c0_i32_0 = arith.constant 0 : i32
    %2 = arith.cmpi ne, %1, %c0_i32_0 : i32
    scf.if %2 {
      %c0_115 = arith.constant 0 : index
      %c0_116 = arith.constant 0 : index
      %c0_117 = arith.constant 0 : index
      %183 = vector.load %arg2[%c0_115, %c0_116, %c0_117] : memref<1x16x48xf32, #tpu.memory_space<vmem>>, vector<1x16x48xf32>
      %184 = vector.shape_cast %183 : vector<1x16x48xf32> to vector<16x48xf32>
      %185 = arith.truncf %184 : vector<16x48xf32> to vector<16x48xbf16>
      %c0_118 = arith.constant 0 : index
      %c0_119 = arith.constant 0 : index
      %186 = vector.load %arg3[%c0_118, %c0_119] : memref<48x32xbf16, #tpu.memory_space<vmem>>, vector<48x32xbf16>
      %cst_120 = arith.constant dense<0.000000e+00> : vector<16x32xf32>
      %187 = tpu.matmul %185, %186, %cst_120 {dimension_numbers = #tpu.dot_dimension_numbers<[1], [0], [0], [1], [0, 0, 1, 1], [], []>} : vector<16x48xbf16>, vector<48x32xbf16>, vector<16x32xf32> -> vector<16x32xf32>
      %c0_121 = arith.constant 0 : index
      %c0_122 = arith.constant 0 : index
      %188 = vector.load %arg4[%c0_121, %c0_122] : memref<16x32xf32, #tpu.memory_space<vmem>>, vector<16x32xf32>
      %189 = arith.addf %187, %188 : vector<16x32xf32>
      %c0_123 = arith.constant 0 : index
      %c0_124 = arith.constant 0 : index
      %190 = vector.load %arg5[%c0_123, %c0_124] : memref<5x32xf32, #tpu.memory_space<vmem>>, vector<5x32xf32>
      %c0_125 = arith.constant 0 : index
      %c0_126 = arith.constant 0 : index
      %191 = vector.load %arg20[%c0_125, %c0_126] : memref<21x32xf32, #tpu.memory_space<vmem>>, vector<5x32xf32>
      tpu.vector_store %arg20[%c0_125, %c0_126], %190 {strides = array<i32>} : memref<21x32xf32, #tpu.memory_space<vmem>>, vector<5x32xf32>,
      %c5 = arith.constant 5 : index
      %c0_127 = arith.constant 0 : index
      %192 = vector.load %arg20[%c5, %c0_127] : memref<21x32xf32, #tpu.memory_space<vmem>>, vector<16x32xf32>
      tpu.vector_store %arg20[%c5, %c0_127], %189 {strides = array<i32>} : memref<21x32xf32, #tpu.memory_space<vmem>>, vector<16x32xf32>,
    } else {
    }
    %c0 = arith.constant 0 : index
    %c0_1 = arith.constant 0 : index
    %c0_2 = arith.constant 0 : index
    %3 = vector.load %arg6[%c0, %c0_1, %c0_2] : memref<1x8x32xf32, #tpu.memory_space<vmem>>, vector<1x8x32xf32>
    %4 = vector.shape_cast %3 : vector<1x8x32xf32> to vector<8x32xf32>
    %5 = vector.extract_strided_slice %4 {offsets = [0, 0], sizes = [1, 32], strides = [1, 1]} : vector<8x32xf32> to vector<1x32xf32>
    %6 = vector.extract_strided_slice %4 {offsets = [1, 0], sizes = [1, 32], strides = [1, 1]} : vector<8x32xf32> to vector<1x32xf32>
    %7 = vector.extract_strided_slice %4 {offsets = [2, 0], sizes = [1, 32], strides = [1, 1]} : vector<8x32xf32> to vector<1x32xf32>
    %8 = vector.extract_strided_slice %4 {offsets = [3, 0], sizes = [1, 32], strides = [1, 1]} : vector<8x32xf32> to vector<1x32xf32>
    %9 = vector.extract_strided_slice %4 {offsets = [4, 0], sizes = [1, 32], strides = [1, 1]} : vector<8x32xf32> to vector<1x32xf32>
    %10 = vector.extract_strided_slice %4 {offsets = [5, 0], sizes = [1, 32], strides = [1, 1]} : vector<8x32xf32> to vector<1x32xf32>
    %11 = vector.extract_strided_slice %4 {offsets = [6, 0], sizes = [1, 32], strides = [1, 1]} : vector<8x32xf32> to vector<1x32xf32>
    %12 = vector.extract_strided_slice %4 {offsets = [7, 0], sizes = [1, 32], strides = [1, 1]} : vector<8x32xf32> to vector<1x32xf32>
    %c0_3 = arith.constant 0 : index
    %c0_4 = arith.constant 0 : index
    %13 = vector.load %arg20[%c0_3, %c0_4] : memref<21x32xf32, #tpu.memory_space<vmem>>, vector<21x32xf32>
    %cst = arith.constant dense<0.000000e+00> : vector<21xf32>
    %14 = vector.multi_reduction <add>, %13, %cst [1] : vector<21x32xf32> to vector<21xf32>
    %15 = vector.shape_cast %14 : vector<21xf32> to vector<21x1xf32>
    %cst_5 = arith.constant 3.200000e+01 : f32
    %16 = vector.broadcast %cst_5 : f32 to vector<21x1xf32>
    %17 = arith.divf %15, %16 : vector<21x1xf32>
    %18 = vector.broadcast %17 : vector<21x1xf32> to vector<21x32xf32>
    %19 = arith.subf %13, %18 : vector<21x32xf32>
    %20 = arith.mulf %19, %19 : vector<21x32xf32>
    %cst_6 = arith.constant dense<0.000000e+00> : vector<21xf32>
    %21 = vector.multi_reduction <add>, %20, %cst_6 [1] : vector<21x32xf32> to vector<21xf32>
    %22 = vector.shape_cast %21 : vector<21xf32> to vector<21x1xf32>
    %cst_7 = arith.constant 3.200000e+01 : f32
    %23 = vector.broadcast %cst_7 : f32 to vector<21x1xf32>
    %24 = arith.divf %22, %23 : vector<21x1xf32>
    %25 = vector.broadcast %17 : vector<21x1xf32> to vector<21x32xf32>
    %26 = arith.subf %13, %25 : vector<21x32xf32>
    %cst_8 = arith.constant 9.99999997E-7 : f32
    %27 = vector.broadcast %cst_8 : f32 to vector<21x1xf32>
    %28 = arith.addf %24, %27 : vector<21x1xf32>
    %29 = math.rsqrt %28 : vector<21x1xf32>
    %30 = vector.broadcast %29 : vector<21x1xf32> to vector<21x32xf32>
    %31 = arith.mulf %26, %30 : vector<21x32xf32>
    %32 = vector.broadcast %5 : vector<1x32xf32> to vector<21x32xf32>
    %33 = arith.mulf %31, %32 : vector<21x32xf32>
    %34 = vector.broadcast %6 : vector<1x32xf32> to vector<21x32xf32>
    %35 = arith.addf %33, %34 : vector<21x32xf32>
    %36 = arith.truncf %35 : vector<21x32xf32> to vector<21x32xbf16>
    %cst_9 = arith.constant 0.000000e+00 : f32
    %37 = vector.broadcast %cst_9 : f32 to vector<21x32xf32>
    %c0_10 = arith.constant 0 : index
    %c0_11 = arith.constant 0 : index
    %c0_12 = arith.constant 0 : index
    %c0_13 = arith.constant 0 : index
    %c0_14 = arith.constant 0 : index
    %38 = vector.load %arg7[%c0_10, %c0_11, %c0_12, %c0_13, %c0_14] : memref<1x3x2x32x16xbf16, #tpu.memory_space<vmem>>, vector<1x1x1x32x16xbf16>
    %39 = vector.shape_cast %38 : vector<1x1x1x32x16xbf16> to vector<32x16xbf16>
    %cst_15 = arith.constant dense<0.000000e+00> : vector<21x16xf32>
    %40 = tpu.matmul %36, %39, %cst_15 {dimension_numbers = #tpu.dot_dimension_numbers<[1], [0], [0], [1], [0, 0, 1, 1], [], []>} : vector<21x32xbf16>, vector<32x16xbf16>, vector<21x16xf32> -> vector<21x16xf32>
    %c0_16 = arith.constant 0 : index
    %c0_17 = arith.constant 0 : index
    %c0_18 = arith.constant 0 : index
    %c0_19 = arith.constant 0 : index
    %c0_20 = arith.constant 0 : index
    %41 = vector.load %arg8[%c0_16, %c0_17, %c0_18, %c0_19, %c0_20] : memref<1x3x2x1x16xf32, #tpu.memory_space<vmem>>, vector<1x1x1x1x16xf32>
    %42 = vector.shape_cast %41 : vector<1x1x1x1x16xf32> to vector<1x16xf32>
    %43 = vector.broadcast %42 : vector<1x16xf32> to vector<21x16xf32>
    %44 = arith.addf %40, %43 : vector<21x16xf32>
    %c0_21 = arith.constant 0 : index
    %c1 = arith.constant 1 : index
    %c0_22 = arith.constant 0 : index
    %c0_23 = arith.constant 0 : index
    %c0_24 = arith.constant 0 : index
    %45 = vector.load %arg7[%c0_21, %c1, %c0_22, %c0_23, %c0_24] : memref<1x3x2x32x16xbf16, #tpu.memory_space<vmem>>, vector<1x1x1x32x16xbf16>
    %46 = vector.shape_cast %45 : vector<1x1x1x32x16xbf16> to vector<32x16xbf16>
    %cst_25 = arith.constant dense<0.000000e+00> : vector<21x16xf32>
    %47 = tpu.matmul %36, %46, %cst_25 {dimension_numbers = #tpu.dot_dimension_numbers<[1], [0], [0], [1], [0, 0, 1, 1], [], []>} : vector<21x32xbf16>, vector<32x16xbf16>, vector<21x16xf32> -> vector<21x16xf32>
    %c0_26 = arith.constant 0 : index
    %c1_27 = arith.constant 1 : index
    %c0_28 = arith.constant 0 : index
    %c0_29 = arith.constant 0 : index
    %c0_30 = arith.constant 0 : index
    %48 = vector.load %arg8[%c0_26, %c1_27, %c0_28, %c0_29, %c0_30] : memref<1x3x2x1x16xf32, #tpu.memory_space<vmem>>, vector<1x1x1x1x16xf32>
    %49 = vector.shape_cast %48 : vector<1x1x1x1x16xf32> to vector<1x16xf32>
    %50 = vector.broadcast %49 : vector<1x16xf32> to vector<21x16xf32>
    %51 = arith.addf %47, %50 : vector<21x16xf32>
    %c0_31 = arith.constant 0 : index
    %c2 = arith.constant 2 : index
    %c0_32 = arith.constant 0 : index
    %c0_33 = arith.constant 0 : index
    %c0_34 = arith.constant 0 : index
    %52 = vector.load %arg7[%c0_31, %c2, %c0_32, %c0_33, %c0_34] : memref<1x3x2x32x16xbf16, #tpu.memory_space<vmem>>, vector<1x1x1x32x16xbf16>
    %53 = vector.shape_cast %52 : vector<1x1x1x32x16xbf16> to vector<32x16xbf16>
    %cst_35 = arith.constant dense<0.000000e+00> : vector<21x16xf32>
    %54 = tpu.matmul %36, %53, %cst_35 {dimension_numbers = #tpu.dot_dimension_numbers<[1], [0], [0], [1], [0, 0, 1, 1], [], []>} : vector<21x32xbf16>, vector<32x16xbf16>, vector<21x16xf32> -> vector<21x16xf32>
    %c0_36 = arith.constant 0 : index
    %c2_37 = arith.constant 2 : index
    %c0_38 = arith.constant 0 : index
    %c0_39 = arith.constant 0 : index
    %c0_40 = arith.constant 0 : index
    %55 = vector.load %arg8[%c0_36, %c2_37, %c0_38, %c0_39, %c0_40] : memref<1x3x2x1x16xf32, #tpu.memory_space<vmem>>, vector<1x1x1x1x16xf32>
    %56 = vector.shape_cast %55 : vector<1x1x1x1x16xf32> to vector<1x16xf32>
    %57 = vector.broadcast %56 : vector<1x16xf32> to vector<21x16xf32>
    %58 = arith.addf %54, %57 : vector<21x16xf32>
    %59 = arith.truncf %44 : vector<21x16xf32> to vector<21x16xbf16>
    %60 = arith.truncf %51 : vector<21x16xf32> to vector<21x16xbf16>
    %cst_41 = arith.constant dense<0.000000e+00> : vector<21x21xf32>
    %61 = tpu.matmul %59, %60, %cst_41 {dimension_numbers = #tpu.dot_dimension_numbers<[1], [1], [0], [0], [0, 0, 1, 0], [], []>} : vector<21x16xbf16>, vector<21x16xbf16>, vector<21x21xf32> -> vector<21x21xf32>
    %cst_42 = arith.constant dense<0xFF800000> : vector<21xf32>
    %62 = vector.multi_reduction <maximumf>, %61, %cst_42 [1] : vector<21x21xf32> to vector<21xf32>
    %63 = vector.shape_cast %62 : vector<21xf32> to vector<21x1xf32>
    %64 = vector.broadcast %63 : vector<21x1xf32> to vector<21x21xf32>
    %65 = arith.subf %61, %64 : vector<21x21xf32>
    %66 = math.exp %65 : vector<21x21xf32>
    %cst_43 = arith.constant dense<0.000000e+00> : vector<21xf32>
    %67 = vector.multi_reduction <add>, %66, %cst_43 [1] : vector<21x21xf32> to vector<21xf32>
    %68 = vector.shape_cast %67 : vector<21xf32> to vector<21x1xf32>
    %69 = tpu.reciprocal %68 {approx = true} : vector<21x1xf32> -> vector<21x1xf32>
    %70 = vector.broadcast %69 : vector<21x1xf32> to vector<21x21xf32>
    %71 = arith.mulf %66, %70 : vector<21x21xf32>
    %72 = arith.truncf %71 : vector<21x21xf32> to vector<21x21xbf16>
    %73 = arith.truncf %58 : vector<21x16xf32> to vector<21x16xbf16>
    %cst_44 = arith.constant dense<0.000000e+00> : vector<21x16xf32>
    %74 = tpu.matmul %72, %73, %cst_44 {dimension_numbers = #tpu.dot_dimension_numbers<[1], [0], [0], [1], [0, 0, 1, 1], [], []>} : vector<21x21xbf16>, vector<21x16xbf16>, vector<21x16xf32> -> vector<21x16xf32>
    %75 = arith.truncf %74 : vector<21x16xf32> to vector<21x16xbf16>
    %c0_45 = arith.constant 0 : index
    %c0_46 = arith.constant 0 : index
    %c0_47 = arith.constant 0 : index
    %c0_48 = arith.constant 0 : index
    %76 = vector.load %arg9[%c0_45, %c0_46, %c0_47, %c0_48] : memref<1x2x16x32xbf16, #tpu.memory_space<vmem>>, vector<1x1x16x32xbf16>
    %77 = vector.shape_cast %76 : vector<1x1x16x32xbf16> to vector<16x32xbf16>
    %cst_49 = arith.constant dense<0.000000e+00> : vector<21x32xf32>
    %78 = tpu.matmul %75, %77, %cst_49 {dimension_numbers = #tpu.dot_dimension_numbers<[1], [0], [0], [1], [0, 0, 1, 1], [], []>} : vector<21x16xbf16>, vector<16x32xbf16>, vector<21x32xf32> -> vector<21x32xf32>
    %79 = arith.addf %37, %78 : vector<21x32xf32>
    %c0_50 = arith.constant 0 : index
    %c0_51 = arith.constant 0 : index
    %c1_52 = arith.constant 1 : index
    %c0_53 = arith.constant 0 : index
    %c0_54 = arith.constant 0 : index
    %80 = vector.load %arg7[%c0_50, %c0_51, %c1_52, %c0_53, %c0_54] : memref<1x3x2x32x16xbf16, #tpu.memory_space<vmem>>, vector<1x1x1x32x16xbf16>
    %81 = vector.shape_cast %80 : vector<1x1x1x32x16xbf16> to vector<32x16xbf16>
    %cst_55 = arith.constant dense<0.000000e+00> : vector<21x16xf32>
    %82 = tpu.matmul %36, %81, %cst_55 {dimension_numbers = #tpu.dot_dimension_numbers<[1], [0], [0], [1], [0, 0, 1, 1], [], []>} : vector<21x32xbf16>, vector<32x16xbf16>, vector<21x16xf32> -> vector<21x16xf32>
    %c0_56 = arith.constant 0 : index
    %c0_57 = arith.constant 0 : index
    %c1_58 = arith.constant 1 : index
    %c0_59 = arith.constant 0 : index
    %c0_60 = arith.constant 0 : index
    %83 = vector.load %arg8[%c0_56, %c0_57, %c1_58, %c0_59, %c0_60] : memref<1x3x2x1x16xf32, #tpu.memory_space<vmem>>, vector<1x1x1x1x16xf32>
    %84 = vector.shape_cast %83 : vector<1x1x1x1x16xf32> to vector<1x16xf32>
    %85 = vector.broadcast %84 : vector<1x16xf32> to vector<21x16xf32>
    %86 = arith.addf %82, %85 : vector<21x16xf32>
    %c0_61 = arith.constant 0 : index
    %c1_62 = arith.constant 1 : index
    %c1_63 = arith.constant 1 : index
    %c0_64 = arith.constant 0 : index
    %c0_65 = arith.constant 0 : index
    %87 = vector.load %arg7[%c0_61, %c1_62, %c1_63, %c0_64, %c0_65] : memref<1x3x2x32x16xbf16, #tpu.memory_space<vmem>>, vector<1x1x1x32x16xbf16>
    %88 = vector.shape_cast %87 : vector<1x1x1x32x16xbf16> to vector<32x16xbf16>
    %cst_66 = arith.constant dense<0.000000e+00> : vector<21x16xf32>
    %89 = tpu.matmul %36, %88, %cst_66 {dimension_numbers = #tpu.dot_dimension_numbers<[1], [0], [0], [1], [0, 0, 1, 1], [], []>} : vector<21x32xbf16>, vector<32x16xbf16>, vector<21x16xf32> -> vector<21x16xf32>
    %c0_67 = arith.constant 0 : index
    %c1_68 = arith.constant 1 : index
    %c1_69 = arith.constant 1 : index
    %c0_70 = arith.constant 0 : index
    %c0_71 = arith.constant 0 : index
    %90 = vector.load %arg8[%c0_67, %c1_68, %c1_69, %c0_70, %c0_71] : memref<1x3x2x1x16xf32, #tpu.memory_space<vmem>>, vector<1x1x1x1x16xf32>
    %91 = vector.shape_cast %90 : vector<1x1x1x1x16xf32> to vector<1x16xf32>
    %92 = vector.broadcast %91 : vector<1x16xf32> to vector<21x16xf32>
    %93 = arith.addf %89, %92 : vector<21x16xf32>
    %c0_72 = arith.constant 0 : index
    %c2_73 = arith.constant 2 : index
    %c1_74 = arith.constant 1 : index
    %c0_75 = arith.constant 0 : index
    %c0_76 = arith.constant 0 : index
    %94 = vector.load %arg7[%c0_72, %c2_73, %c1_74, %c0_75, %c0_76] : memref<1x3x2x32x16xbf16, #tpu.memory_space<vmem>>, vector<1x1x1x32x16xbf16>
    %95 = vector.shape_cast %94 : vector<1x1x1x32x16xbf16> to vector<32x16xbf16>
    %cst_77 = arith.constant dense<0.000000e+00> : vector<21x16xf32>
    %96 = tpu.matmul %36, %95, %cst_77 {dimension_numbers = #tpu.dot_dimension_numbers<[1], [0], [0], [1], [0, 0, 1, 1], [], []>} : vector<21x32xbf16>, vector<32x16xbf16>, vector<21x16xf32> -> vector<21x16xf32>
    %c0_78 = arith.constant 0 : index
    %c2_79 = arith.constant 2 : index
    %c1_80 = arith.constant 1 : index
    %c0_81 = arith.constant 0 : index
    %c0_82 = arith.constant 0 : index
    %97 = vector.load %arg8[%c0_78, %c2_79, %c1_80, %c0_81, %c0_82] : memref<1x3x2x1x16xf32, #tpu.memory_space<vmem>>, vector<1x1x1x1x16xf32>
    %98 = vector.shape_cast %97 : vector<1x1x1x1x16xf32> to vector<1x16xf32>
    %99 = vector.broadcast %98 : vector<1x16xf32> to vector<21x16xf32>
    %100 = arith.addf %96, %99 : vector<21x16xf32>
    %101 = arith.truncf %86 : vector<21x16xf32> to vector<21x16xbf16>
    %102 = arith.truncf %93 : vector<21x16xf32> to vector<21x16xbf16>
    %cst_83 = arith.constant dense<0.000000e+00> : vector<21x21xf32>
    %103 = tpu.matmul %101, %102, %cst_83 {dimension_numbers = #tpu.dot_dimension_numbers<[1], [1], [0], [0], [0, 0, 1, 0], [], []>} : vector<21x16xbf16>, vector<21x16xbf16>, vector<21x21xf32> -> vector<21x21xf32>
    %cst_84 = arith.constant dense<0xFF800000> : vector<21xf32>
    %104 = vector.multi_reduction <maximumf>, %103, %cst_84 [1] : vector<21x21xf32> to vector<21xf32>
    %105 = vector.shape_cast %104 : vector<21xf32> to vector<21x1xf32>
    %106 = vector.broadcast %105 : vector<21x1xf32> to vector<21x21xf32>
    %107 = arith.subf %103, %106 : vector<21x21xf32>
    %108 = math.exp %107 : vector<21x21xf32>
    %cst_85 = arith.constant dense<0.000000e+00> : vector<21xf32>
    %109 = vector.multi_reduction <add>, %108, %cst_85 [1] : vector<21x21xf32> to vector<21xf32>
    %110 = vector.shape_cast %109 : vector<21xf32> to vector<21x1xf32>
    %111 = tpu.reciprocal %110 {approx = true} : vector<21x1xf32> -> vector<21x1xf32>
    %112 = vector.broadcast %111 : vector<21x1xf32> to vector<21x21xf32>
    %113 = arith.mulf %108, %112 : vector<21x21xf32>
    %114 = arith.truncf %113 : vector<21x21xf32> to vector<21x21xbf16>
    %115 = arith.truncf %100 : vector<21x16xf32> to vector<21x16xbf16>
    %cst_86 = arith.constant dense<0.000000e+00> : vector<21x16xf32>
    %116 = tpu.matmul %114, %115, %cst_86 {dimension_numbers = #tpu.dot_dimension_numbers<[1], [0], [0], [1], [0, 0, 1, 1], [], []>} : vector<21x21xbf16>, vector<21x16xbf16>, vector<21x16xf32> -> vector<21x16xf32>
    %117 = arith.truncf %116 : vector<21x16xf32> to vector<21x16xbf16>
    %c0_87 = arith.constant 0 : index
    %c1_88 = arith.constant 1 : index
    %c0_89 = arith.constant 0 : index
    %c0_90 = arith.constant 0 : index
    %118 = vector.load %arg9[%c0_87, %c1_88, %c0_89, %c0_90] : memref<1x2x16x32xbf16, #tpu.memory_space<vmem>>, vector<1x1x16x32xbf16>
    %119 = vector.shape_cast %118 : vector<1x1x16x32xbf16> to vector<16x32xbf16>
    %cst_91 = arith.constant dense<0.000000e+00> : vector<21x32xf32>
    %120 = tpu.matmul %117, %119, %cst_91 {dimension_numbers = #tpu.dot_dimension_numbers<[1], [0], [0], [1], [0, 0, 1, 1], [], []>} : vector<21x16xbf16>, vector<16x32xbf16>, vector<21x32xf32> -> vector<21x32xf32>
    %121 = arith.addf %79, %120 : vector<21x32xf32>
    %122 = vector.broadcast %7 : vector<1x32xf32> to vector<21x32xf32>
    %123 = arith.addf %121, %122 : vector<21x32xf32>
    %124 = vector.broadcast %8 : vector<1x32xf32> to vector<21x32xf32>
    %125 = arith.mulf %123, %124 : vector<21x32xf32>
    %126 = arith.addf %13, %125 : vector<21x32xf32>
    %cst_92 = arith.constant dense<0.000000e+00> : vector<21xf32>
    %127 = vector.multi_reduction <add>, %126, %cst_92 [1] : vector<21x32xf32> to vector<21xf32>
    %128 = vector.shape_cast %127 : vector<21xf32> to vector<21x1xf32>
    %cst_93 = arith.constant 3.200000e+01 : f32
    %129 = vector.broadcast %cst_93 : f32 to vector<21x1xf32>
    %130 = arith.divf %128, %129 : vector<21x1xf32>
    %131 = vector.broadcast %130 : vector<21x1xf32> to vector<21x32xf32>
    %132 = arith.subf %126, %131 : vector<21x32xf32>
    %133 = arith.mulf %132, %132 : vector<21x32xf32>
    %cst_94 = arith.constant dense<0.000000e+00> : vector<21xf32>
    %134 = vector.multi_reduction <add>, %133, %cst_94 [1] : vector<21x32xf32> to vector<21xf32>
    %135 = vector.shape_cast %134 : vector<21xf32> to vector<21x1xf32>
    %cst_95 = arith.constant 3.200000e+01 : f32
    %136 = vector.broadcast %cst_95 : f32 to vector<21x1xf32>
    %137 = arith.divf %135, %136 : vector<21x1xf32>
    %138 = vector.broadcast %130 : vector<21x1xf32> to vector<21x32xf32>
    %139 = arith.subf %126, %138 : vector<21x32xf32>
    %cst_96 = arith.constant 9.99999997E-7 : f32
    %140 = vector.broadcast %cst_96 : f32 to vector<21x1xf32>
    %141 = arith.addf %137, %140 : vector<21x1xf32>
    %142 = math.rsqrt %141 : vector<21x1xf32>
    %143 = vector.broadcast %142 : vector<21x1xf32> to vector<21x32xf32>
    %144 = arith.mulf %139, %143 : vector<21x32xf32>
    %145 = vector.broadcast %9 : vector<1x32xf32> to vector<21x32xf32>
    %146 = arith.mulf %144, %145 : vector<21x32xf32>
    %147 = vector.broadcast %10 : vector<1x32xf32> to vector<21x32xf32>
    %148 = arith.addf %146, %147 : vector<21x32xf32>
    %149 = arith.truncf %148 : vector<21x32xf32> to vector<21x32xbf16>
    %c0_97 = arith.constant 0 : index
    %c0_98 = arith.constant 0 : index
    %c0_99 = arith.constant 0 : index
    %150 = vector.load %arg10[%c0_97, %c0_98, %c0_99] : memref<1x32x128xbf16, #tpu.memory_space<vmem>>, vector<1x32x128xbf16>
    %151 = vector.shape_cast %150 : vector<1x32x128xbf16> to vector<32x128xbf16>
    %cst_100 = arith.constant dense<0.000000e+00> : vector<21x128xf32>
    %152 = tpu.matmul %149, %151, %cst_100 {dimension_numbers = #tpu.dot_dimension_numbers<[1], [0], [0], [1], [0, 0, 1, 1], [], []>} : vector<21x32xbf16>, vector<32x128xbf16>, vector<21x128xf32> -> vector<21x128xf32>
    %c0_101 = arith.constant 0 : index
    %c0_102 = arith.constant 0 : index
    %c0_103 = arith.constant 0 : index
    %153 = vector.load %arg11[%c0_101, %c0_102, %c0_103] : memref<1x1x128xf32, #tpu.memory_space<vmem>>, vector<1x1x128xf32>
    %154 = vector.shape_cast %153 : vector<1x1x128xf32> to vector<1x128xf32>
    %155 = vector.broadcast %154 : vector<1x128xf32> to vector<21x128xf32>
    %156 = arith.addf %152, %155 : vector<21x128xf32>
    %cst_104 = arith.constant 5.000000e-01 : f32
    %157 = vector.broadcast %cst_104 : f32 to vector<21x128xf32>
    %158 = arith.mulf %157, %156 : vector<21x128xf32>
    %cst_105 = arith.constant 4.471500e-02 : f32
    %159 = vector.broadcast %cst_105 : f32 to vector<21x128xf32>
    %160 = arith.mulf %159, %156 : vector<21x128xf32>
    %161 = arith.mulf %160, %156 : vector<21x128xf32>
    %162 = arith.mulf %161, %156 : vector<21x128xf32>
    %163 = arith.addf %156, %162 : vector<21x128xf32>
    %cst_106 = arith.constant 0.797884583 : f32
    %164 = vector.broadcast %cst_106 : f32 to vector<21x128xf32>
    %165 = arith.mulf %164, %163 : vector<21x128xf32>
    %166 = math.tanh %165 : vector<21x128xf32>
    %cst_107 = arith.constant 1.000000e+00 : f32
    %167 = vector.broadcast %cst_107 : f32 to vector<21x128xf32>
    %168 = arith.addf %167, %166 : vector<21x128xf32>
    %169 = arith.mulf %158, %168 : vector<21x128xf32>
    %170 = arith.truncf %169 : vector<21x128xf32> to vector<21x128xbf16>
    %c0_108 = arith.constant 0 : index
    %c0_109 = arith.constant 0 : index
    %c0_110 = arith.constant 0 : index
    %171 = vector.load %arg12[%c0_108, %c0_109, %c0_110] : memref<1x128x32xbf16, #tpu.memory_space<vmem>>, vector<1x128x32xbf16>
    %172 = vector.shape_cast %171 : vector<1x128x32xbf16> to vector<128x32xbf16>
    %cst_111 = arith.constant dense<0.000000e+00> : vector<21x32xf32>
    %173 = tpu.matmul %170, %172, %cst_111 {dimension_numbers = #tpu.dot_dimension_numbers<[1], [0], [0], [1], [0, 0, 1, 1], [], []>} : vector<21x128xbf16>, vector<128x32xbf16>, vector<21x32xf32> -> vector<21x32xf32>
    %174 = vector.broadcast %11 : vector<1x32xf32> to vector<21x32xf32>
    %175 = arith.addf %173, %174 : vector<21x32xf32>
    %176 = vector.broadcast %12 : vector<1x32xf32> to vector<21x32xf32>
    %177 = arith.mulf %175, %176 : vector<21x32xf32>
    %178 = arith.addf %126, %177 : vector<21x32xf32>
    %c0_112 = arith.constant 0 : index
    %c0_113 = arith.constant 0 : index
    %179 = vector.load %arg20[%c0_112, %c0_113] : memref<21x32xf32, #tpu.memory_space<vmem>>, vector<21x32xf32>
    tpu.vector_store %arg20[%c0_112, %c0_113], %178 {strides = array<i32>} : memref<21x32xf32, #tpu.memory_space<vmem>>, vector<21x32xf32>,
    %c1_i32 = arith.constant 1 : i32
    %180 = arith.cmpi eq, %arg1, %c1_i32 : i32
    %181 = arith.extui %180 : i1 to i32
    %c0_i32_114 = arith.constant 0 : i32
    %182 = arith.cmpi ne, %181, %c0_i32_114 : i32
    scf.if %182 {
      %183 = vector.extract_strided_slice %178 {offsets = [0, 0], sizes = [1, 32], strides = [1, 1]} : vector<21x32xf32> to vector<1x32xf32>
      %c0_115 = arith.constant 0 : index
      %c0_116 = arith.constant 0 : index
      %184 = vector.load %arg13[%c0_115, %c0_116] : memref<1x32xf32, #tpu.memory_space<vmem>>, vector<1x32xf32>
      %c0_117 = arith.constant 0 : index
      %c0_118 = arith.constant 0 : index
      %185 = vector.load %arg14[%c0_117, %c0_118] : memref<1x32xf32, #tpu.memory_space<vmem>>, vector<1x32xf32>
      %cst_119 = arith.constant dense<0.000000e+00> : vector<1xf32>
      %186 = vector.multi_reduction <add>, %183, %cst_119 [1] : vector<1x32xf32> to vector<1xf32>
      %187 = vector.shape_cast %186 : vector<1xf32> to vector<1x1xf32>
      %cst_120 = arith.constant 3.200000e+01 : f32
      %188 = vector.broadcast %cst_120 : f32 to vector<1x1xf32>
      %189 = arith.divf %187, %188 : vector<1x1xf32>
      %190 = vector.broadcast %189 : vector<1x1xf32> to vector<1x32xf32>
      %191 = arith.subf %183, %190 : vector<1x32xf32>
      %192 = arith.mulf %191, %191 : vector<1x32xf32>
      %cst_121 = arith.constant dense<0.000000e+00> : vector<1xf32>
      %193 = vector.multi_reduction <add>, %192, %cst_121 [1] : vector<1x32xf32> to vector<1xf32>
      %194 = vector.shape_cast %193 : vector<1xf32> to vector<1x1xf32>
      %cst_122 = arith.constant 3.200000e+01 : f32
      %195 = vector.broadcast %cst_122 : f32 to vector<1x1xf32>
      %196 = arith.divf %194, %195 : vector<1x1xf32>
      %197 = vector.broadcast %189 : vector<1x1xf32> to vector<1x32xf32>
      %198 = arith.subf %183, %197 : vector<1x32xf32>
      %cst_123 = arith.constant 9.99999997E-7 : f32
      %199 = vector.broadcast %cst_123 : f32 to vector<1x1xf32>
      %200 = arith.addf %196, %199 : vector<1x1xf32>
      %201 = math.rsqrt %200 : vector<1x1xf32>
      %202 = vector.broadcast %201 : vector<1x1xf32> to vector<1x32xf32>
      %203 = arith.mulf %198, %202 : vector<1x32xf32>
      %204 = arith.mulf %203, %184 : vector<1x32xf32>
      %205 = arith.addf %204, %185 : vector<1x32xf32>
      %c0_124 = arith.constant 0 : index
      %c0_125 = arith.constant 0 : index
      %206 = vector.load %arg13[%c0_124, %c0_125] : memref<1x32xf32, #tpu.memory_space<vmem>>, vector<1x32xf32>
      %c0_126 = arith.constant 0 : index
      %c0_127 = arith.constant 0 : index
      %207 = vector.load %arg14[%c0_126, %c0_127] : memref<1x32xf32, #tpu.memory_space<vmem>>, vector<1x32xf32>
      %cst_128 = arith.constant dense<0.000000e+00> : vector<1xf32>
      %208 = vector.multi_reduction <add>, %205, %cst_128 [1] : vector<1x32xf32> to vector<1xf32>
      %209 = vector.shape_cast %208 : vector<1xf32> to vector<1x1xf32>
      %cst_129 = arith.constant 3.200000e+01 : f32
      %210 = vector.broadcast %cst_129 : f32 to vector<1x1xf32>
      %211 = arith.divf %209, %210 : vector<1x1xf32>
      %212 = vector.broadcast %211 : vector<1x1xf32> to vector<1x32xf32>
      %213 = arith.subf %205, %212 : vector<1x32xf32>
      %214 = arith.mulf %213, %213 : vector<1x32xf32>
      %cst_130 = arith.constant dense<0.000000e+00> : vector<1xf32>
      %215 = vector.multi_reduction <add>, %214, %cst_130 [1] : vector<1x32xf32> to vector<1xf32>
      %216 = vector.shape_cast %215 : vector<1xf32> to vector<1x1xf32>
      %cst_131 = arith.constant 3.200000e+01 : f32
      %217 = vector.broadcast %cst_131 : f32 to vector<1x1xf32>
      %218 = arith.divf %216, %217 : vector<1x1xf32>
      %219 = vector.broadcast %211 : vector<1x1xf32> to vector<1x32xf32>
      %220 = arith.subf %205, %219 : vector<1x32xf32>
      %cst_132 = arith.constant 9.99999997E-7 : f32
      %221 = vector.broadcast %cst_132 : f32 to vector<1x1xf32>
      %222 = arith.addf %218, %221 : vector<1x1xf32>
      %223 = math.rsqrt %222 : vector<1x1xf32>
      %224 = vector.broadcast %223 : vector<1x1xf32> to vector<1x32xf32>
      %225 = arith.mulf %220, %224 : vector<1x32xf32>
      %226 = arith.mulf %225, %206 : vector<1x32xf32>
      %227 = arith.addf %226, %207 : vector<1x32xf32>
      %228 = arith.truncf %227 : vector<1x32xf32> to vector<1x32xbf16>
      %c0_133 = arith.constant 0 : index
      %c0_134 = arith.constant 0 : index
      %229 = vector.load %arg15[%c0_133, %c0_134] : memref<32x32xbf16, #tpu.memory_space<vmem>>, vector<32x32xbf16>
      %cst_135 = arith.constant dense<0.000000e+00> : vector<1x32xf32>
      %230 = tpu.matmul %228, %229, %cst_135 {dimension_numbers = #tpu.dot_dimension_numbers<[1], [0], [0], [1], [0, 0, 1, 1], [], []>} : vector<1x32xbf16>, vector<32x32xbf16>, vector<1x32xf32> -> vector<1x32xf32>
      %c0_136 = arith.constant 0 : index
      %c0_137 = arith.constant 0 : index
      %231 = vector.load %arg16[%c0_136, %c0_137] : memref<1x32xf32, #tpu.memory_space<vmem>>, vector<1x32xf32>
      %232 = arith.addf %230, %231 : vector<1x32xf32>
      %cst_138 = arith.constant 0.000000e+00 : f32
      %233 = vector.broadcast %cst_138 : f32 to vector<1x32xf32>
      %234 = arith.maximumf %232, %233 : vector<1x32xf32>
      %235 = arith.truncf %234 : vector<1x32xf32> to vector<1x32xbf16>
      %c0_139 = arith.constant 0 : index
      %c0_140 = arith.constant 0 : index
      %236 = vector.load %arg17[%c0_139, %c0_140] : memref<32x128xbf16, #tpu.memory_space<vmem>>, vector<32x128xbf16>
      %cst_141 = arith.constant dense<0.000000e+00> : vector<1x128xf32>
      %237 = tpu.matmul %235, %236, %cst_141 {dimension_numbers = #tpu.dot_dimension_numbers<[1], [0], [0], [1], [0, 0, 1, 1], [], []>} : vector<1x32xbf16>, vector<32x128xbf16>, vector<1x128xf32> -> vector<1x128xf32>
      %c0_142 = arith.constant 0 : index
      %c0_143 = arith.constant 0 : index
      %238 = vector.load %arg18[%c0_142, %c0_143] : memref<1x128xf32, #tpu.memory_space<vmem>>, vector<1x128xf32>
      %239 = arith.addf %237, %238 : vector<1x128xf32>
      %240 = vector.shape_cast %239 : vector<1x128xf32> to vector<1x128xf32>
      %241 = vector.broadcast %240 : vector<1x128xf32> to vector<8x128xf32>
      %c0_144 = arith.constant 0 : index
      %c0_145 = arith.constant 0 : index
      %c0_146 = arith.constant 0 : index
      %242 = vector.load %arg19[%c0_144, %c0_145, %c0_146] : memref<1x8x128xf32, #tpu.memory_space<vmem>>, vector<1x8x128xf32>
      %243 = vector.shape_cast %242 : vector<1x8x128xf32> to vector<8x128xf32>
      %244 = vector.shape_cast %241 : vector<8x128xf32> to vector<1x8x128xf32>
      tpu.vector_store %arg19[%c0_144, %c0_145, %c0_146], %244 {strides = array<i32>} : memref<1x8x128xf32, #tpu.memory_space<vmem>>, vector<1x8x128xf32>,
    } else {
    }
    return
  }
  func.func @transform_0(%arg0: i32, %arg1: i32) -> (i32, i32, i32) {
    %c0_i32 = arith.constant 0 : i32
    %c0_i32_0 = arith.constant 0 : i32
    %c0_i32_1 = arith.constant 0 : i32
    return %arg0, %c0_i32, %c0_i32_0 : i32, i32, i32
  }
  func.func @transform_1(%arg0: i32, %arg1: i32) -> (i32, i32) {
    %c0_i32 = arith.constant 0 : i32
    %c0_i32_0 = arith.constant 0 : i32
    %c0_i32_1 = arith.constant 0 : i32
    return %c0_i32, %c0_i32_0 : i32, i32
  }
  func.func @transform_2(%arg0: i32, %arg1: i32) -> (i32, i32) {
    %c0_i32 = arith.constant 0 : i32
    %c0_i32_0 = arith.constant 0 : i32
    %c0_i32_1 = arith.constant 0 : i32
    return %c0_i32, %c0_i32_0 : i32, i32
  }
  func.func @transform_3(%arg0: i32, %arg1: i32) -> (i32, i32) {
    %c0_i32 = arith.constant 0 : i32
    %c0_i32_0 = arith.constant 0 : i32
    %c0_i32_1 = arith.constant 0 : i32
    return %c0_i32, %c0_i32_0 : i32, i32
  }
  func.func @transform_4(%arg0: i32, %arg1: i32) -> (i32, i32, i32) {
    %c0_i32 = arith.constant 0 : i32
    %c0_i32_0 = arith.constant 0 : i32
    %c0_i32_1 = arith.constant 0 : i32
    return %arg1, %c0_i32, %c0_i32_0 : i32, i32, i32
  }
  func.func @transform_5(%arg0: i32, %arg1: i32) -> (i32, i32, i32, i32, i32) {
    %c0_i32 = arith.constant 0 : i32
    %c0_i32_0 = arith.constant 0 : i32
    %c0_i32_1 = arith.constant 0 : i32
    %c0_i32_2 = arith.constant 0 : i32
    %c0_i32_3 = arith.constant 0 : i32
    return %arg1, %c0_i32, %c0_i32_0, %c0_i32_1, %c0_i32_2 : i32, i32, i32, i32, i32
  }
  func.func @transform_6(%arg0: i32, %arg1: i32) -> (i32, i32, i32, i32, i32) {
    %c0_i32 = arith.constant 0 : i32
    %c0_i32_0 = arith.constant 0 : i32
    %c0_i32_1 = arith.constant 0 : i32
    %c0_i32_2 = arith.constant 0 : i32
    %c0_i32_3 = arith.constant 0 : i32
    return %arg1, %c0_i32, %c0_i32_0, %c0_i32_1, %c0_i32_2 : i32, i32, i32, i32, i32
  }
  func.func @transform_7(%arg0: i32, %arg1: i32) -> (i32, i32, i32, i32) {
    %c0_i32 = arith.constant 0 : i32
    %c0_i32_0 = arith.constant 0 : i32
    %c0_i32_1 = arith.constant 0 : i32
    %c0_i32_2 = arith.constant 0 : i32
    return %arg1, %c0_i32, %c0_i32_0, %c0_i32_1 : i32, i32, i32, i32
  }
  func.func @transform_8(%arg0: i32, %arg1: i32) -> (i32, i32, i32) {
    %c0_i32 = arith.constant 0 : i32
    %c0_i32_0 = arith.constant 0 : i32
    %c0_i32_1 = arith.constant 0 : i32
    return %arg1, %c0_i32, %c0_i32_0 : i32, i32, i32
  }
  func.func @transform_9(%arg0: i32, %arg1: i32) -> (i32, i32, i32) {
    %c0_i32 = arith.constant 0 : i32
    %c0_i32_0 = arith.constant 0 : i32
    %c0_i32_1 = arith.constant 0 : i32
    return %arg1, %c0_i32, %c0_i32_0 : i32, i32, i32
  }
  func.func @transform_10(%arg0: i32, %arg1: i32) -> (i32, i32, i32) {
    %c0_i32 = arith.constant 0 : i32
    %c0_i32_0 = arith.constant 0 : i32
    %c0_i32_1 = arith.constant 0 : i32
    return %arg1, %c0_i32, %c0_i32_0 : i32, i32, i32
  }
  func.func @transform_11(%arg0: i32, %arg1: i32) -> (i32, i32) {
    %c0_i32 = arith.constant 0 : i32
    %c0_i32_0 = arith.constant 0 : i32
    %c0_i32_1 = arith.constant 0 : i32
    return %c0_i32, %c0_i32_0 : i32, i32
  }
  func.func @transform_12(%arg0: i32, %arg1: i32) -> (i32, i32) {
    %c0_i32 = arith.constant 0 : i32
    %c0_i32_0 = arith.constant 0 : i32
    %c0_i32_1 = arith.constant 0 : i32
    return %c0_i32, %c0_i32_0 : i32, i32
  }
  func.func @transform_13(%arg0: i32, %arg1: i32) -> (i32, i32) {
    %c0_i32 = arith.constant 0 : i32
    %c0_i32_0 = arith.constant 0 : i32
    %c0_i32_1 = arith.constant 0 : i32
    return %c0_i32, %c0_i32_0 : i32, i32
  }
  func.func @transform_14(%arg0: i32, %arg1: i32) -> (i32, i32) {
    %c0_i32 = arith.constant 0 : i32
    %c0_i32_0 = arith.constant 0 : i32
    %c0_i32_1 = arith.constant 0 : i32
    return %c0_i32, %c0_i32_0 : i32, i32
  }
  func.func @transform_15(%arg0: i32, %arg1: i32) -> (i32, i32) {
    %c0_i32 = arith.constant 0 : i32
    %c0_i32_0 = arith.constant 0 : i32
    %c0_i32_1 = arith.constant 0 : i32
    return %c0_i32, %c0_i32_0 : i32, i32
  }
  func.func @transform_16(%arg0: i32, %arg1: i32) -> (i32, i32) {
    %c0_i32 = arith.constant 0 : i32
    %c0_i32_0 = arith.constant 0 : i32
    %c0_i32_1 = arith.constant 0 : i32
    return %c0_i32, %c0_i32_0 : i32, i32
  }
  func.func @transform_17(%arg0: i32, %arg1: i32) -> (i32, i32, i32) {
    %c0_i32 = arith.constant 0 : i32
    %c0_i32_0 = arith.constant 0 : i32
    %c0_i32_1 = arith.constant 0 : i32
    return %arg0, %c0_i32, %c0_i32_0 : i32, i32, i32
  }
}

</mosaic_0001>

<bundles_post_ra>
// kernel: forward.1
= control target key start
LH: loop header
LB: loop body
LE: loop exit
PB: predicated region body
PF: predicated region fallthrough
CT: control target
= control target key end

     0   :  { %s2942_s24 = smov 0   ;;  %s2944_s25 = smov 0   ;;  %s3262_s0 = inlined_call_operand.vmem [shape: f32[2,16,48], index: 0, kind: input, shape index: {}]   ;;  %s3263_s1 = inlined_call_operand.vmem [shape: bf16[48,32], index: 1, kind: input, shape index: {}]   ;;  %s3264_s2 = inlined_call_operand.vmem [shape: f32[16,32], index: 2, kind: input, shape index: {}]   ;;  %s3265_s3 = inlined_call_operand.vmem [shape: f32[5,32], index: 3, kind: input, shape index: {}]   ;;  %s3266_s4 = inlined_call_operand.vmem [shape: f32[2,8,32], index: 4, kind: input, shape index: {}]   ;;  %s3267_s5 = inlined_call_operand.vmem [shape: bf16[2,3,2,32,16], index: 5, kind: input, shape index: {}]   ;;  %s3268_s6 = inlined_call_operand.vmem [shape: f32[2,3,2,1,16], index: 6, kind: input, shape index: {}]   ;;  %s3269_s7 = inlined_call_operand.vmem [shape: bf16[2,2,16,32], index: 7, kind: input, shape index: {}]   ;;  %s3270_s8 = inlined_call_operand.vmem [shape: bf16[2,32,128], index: 8, kind: input, shape index: {}]   ;;  %s3271_s9 = inlined_call_operand.vmem [shape: f32[2,1,128], index: 9, kind: input, shape index: {}]   ;;  %s3272_s10 = inlined_call_operand.vmem [shape: bf16[2,128,32], index: 10, kind: input, shape index: {}]   ;;  %s3273_s11 = inlined_call_operand.vmem [shape: f32[1,32], index: 11, kind: input, shape index: {}]   ;;  %s3274_s12 = inlined_call_operand.vmem [shape: f32[1,32], index: 12, kind: input, shape index: {}]   ;;  %s3275_s13 = inlined_call_operand.vmem [shape: bf16[32,32], index: 13, kind: input, shape index: {}]   ;;  %s3276_s14 = inlined_call_operand.vmem [shape: f32[1,32], index: 14, kind: input, shape index: {}]   ;;  %s3277_s15 = inlined_call_operand.vmem [shape: bf16[32,128], index: 15, kind: input, shape index: {}]   ;;  %s3278_s16 = inlined_call_operand.vmem [shape: f32[1,128], index: 16, kind: input, shape index: {}]   ;;  %s3279_s17 = inlined_call_operand.vmem [shape: f32[2,8,128], index: 17, kind: output, shape index: {}]  }
   0x1   :  { %3286 = sst [smem:[#allocation8_spill]] %s3262_s0  ;;  %s2946_s26 = smov 0  }
   0x2   :  { %3287 = sst [smem:[#allocation9_spill]] %s3263_s1  ;;  %s2948_s27 = smov 0  }
   0x3   :  { %3288 = sst [smem:[#allocation10_spill]] %s3266_s4  ;;  %s2950_s28 = smov 0  }
   0x4   :  { %3289 = sst [smem:[#allocation11_spill]] %s3267_s5 }
   0x5   :  { %3290 = sst [smem:[#allocation12_spill]] %s3269_s7 }
   0x6   :  { %3291 = sst [smem:[#allocation13_spill]] %s3273_s11 }
   0x7   :  { %3292 = sst [smem:[#allocation14_spill]] %s3274_s12 }
   0x8   :  { %3293 = sst [smem:[#allocation15_spill]] %s3275_s13 }
   0x9   :  { %3294 = sst [smem:[#allocation16_spill]] %s3276_s14 }
   0xa   :  { %3295 = sst [smem:[#allocation17_spill]] %s3277_s15 }
   0xb   :  { %3296 = sst [smem:[#allocation18_spill]] %s3278_s16 }
   0xc LB: > { %3297 = sst [smem:[#allocation3_spill]] %s2837_s26  ;;  %s36_s29 = sadd.s32 1, %s2837_s26  ;;  %s2845_s28 = sphi %s2950_s28, %s27_s28   ;;  %s2841_s27 = sphi %s2948_s27, %s3317_s27   ;;  %s2837_s26 = sphi %s2946_s26, %s3316_s26   ;;  %s2833_s25 = sphi %s2944_s25, %s3315_s25   ;;  %s2829_s24 = sphi %s2942_s24, %s3314_s24  }
   0xd   : > { %3298 = sst [smem:[#allocation4_spill]] %s2841_s27  ;;  %s39_s0 = sadd.s32 1, %s2841_s27 }
   0xe   : > { %3299 = sst [smem:[#allocation5_spill]] %s2845_s28  ;;  %p37_p0 = scmp.ge.s32.totalorder %s36_s29, 2 }
   0xf   : > { %p2349_p1 = scmp.ge.s32.totalorder %s2845_s28, 1  ;;  %p565_p2 = scmp.lt.s32.totalorder %s2845_s28, 5 }
  0x10   : > { %s3319_s29 = smov (%p37_p0, %s36_s29), 0  ;;  %s3321_s0 = smov (!%p37_p0, %s39_s0), %s2841_s27 }
  0x11   : > { %3300 = sst [smem:[#allocation6_spill]] %s3319_s29  ;;  %p566_p3 = pnand %p2349_p1, %p565_p2 }
  0x12   : > { %p41_p4 = scmp.ge.s32.totalorder %s3321_s0, 2  ;;  %p647_p5 = scmp.lt.s32.totalorder (!%p566_p3), %s2833_s25, 1 }
  0x13   : > { %569 = sbr.rel (%p566_p3) target bundleno = 4409 (0x1139), region = 88  ;;  %p652_p6 = scmp.lt.s32.totalorder (!%p566_p3), %s2829_s24, 1 }
  0x14   : > { %s3323_s0 = smov (%p41_p4, %s3321_s0), 0  ;;  %s3302_s21 = sld [smem:[#allocation8_spill]] (!%p566_p3) }
  0x15   : > { %3301 = sst [smem:[#allocation7_spill]] %s3323_s0  ;;  %s3303_s4 = sld [smem:[#allocation10_spill]] (!%p566_p3) }
  0x16   : > { %s3304_s5 = sld [smem:[#allocation11_spill]] (!%p566_p3)  ;;  %s3305_s7 = sld [smem:[#allocation12_spill]] (!%p566_p3) }
  0x17   : > { %p2361_p7 = scmp.ne.s32.totalorder (!%p566_p3), %s2829_s24, 0 }
  0x1a   : > { %s3325_s25 = smov (!%p647_p5, %s2833_s25), 1  ;;  %s3306_s1 = sld [smem:[#allocation9_spill]] (!%p2361_p7)  ;;  %v2847_v1 = vmov (!%p2361_p7), 0.0   ;;  %vm2848_vm0 = vmmov (!%p2361_p7), 0   ;;  %vm721_vm1 = vcmask (!%p2361_p7), 392192   ;;  %vm767_vm2 = vcmask (!%p2361_p7), 258048  }
  0x1b   : > { %s2976_s30 = scalar_select %p652_p6, %s2829_s24, 1 }
  0x1c   : > { %s2459_s18 = sshll.u32 %s3325_s25, 4  ;;  %s2360_s19 = sshll.u32 %s3325_s25, 3  ;;  %2533 = vmatprep.subr.bf16.mxu0 (!%p2361_p7), %v2847_v1  ;;  %2539 = vmatprep.mubr.msk.bf16.mxu0 (!%p2361_p7), %vm2848_vm0, %v2847_v1  ;;  %v766_v7 = vld [vmem:[%s3265_s3] sm:$0x1f] (!%p2361_p7)  ;;  %vm769_vm3 = vcmask (!%p2361_p7), 261120   ;;  %v702_v10 = vld [vmem:[%s3264_s2 + $0x8] sm:$0xff] (!%p2361_p7) }
  0x1d   : > { %s651_s22 = scalar_lea.vmem %s3302_s21, %s2459_s18  ;;  %s2352_s23 = sshll.u32 %s2976_s30, 3  ;;  %768 = vst.msk [vmem:[#allocation2] sm:$0x1f] (!%p2361_p7), %vm767_vm2, %v766_v7  ;;  %v701_v8 = vld [vmem:[%s3264_s2] sm:$0xff] (!%p2361_p7) }
  0x1e   : > { %s2985_s27 = scalar_lea.vmem %s3303_s4, %s2352_s23  ;;  %s2683_s26 = smul.u32 96, %s2976_s30  ;;  %v692_v4 = vld [vmem:[%s651_s22] sm:$0xff] (!%p2361_p7)  ;;  %v693_v5 = vld [vmem:[%s651_s22 + $0x8] sm:$0xff] (!%p2361_p7) }
  0x1f   : > { %s2684_s28 = smul.u32 6, %s2976_s30  ;;  %s2460_s16 = sshll.u32 %s2976_s30, 4  ;;  %v694_v6 = vpack.c.bf16 (!%p2361_p7), %v693_v5, %v692_v4 }
  0x20   : > { %s2993_s13 = scalar_lea.vmem %s3304_s5, %s2683_s26  ;;  %s2998_s11 = scalar_lea.vmem %s3305_s7, %s2460_s16  ;;  %v2730_v0 = vld [vmem:[%s3306_s1] sm:$0xff] (!%p2361_p7)   ;;  %v2731_v2 = vld [vmem:[%s3306_s1 + $0x8] sm:$0xff] (!%p2361_p7)   ;;  %v2732_v3 = vld [vmem:[%s3306_s1 + $0x10] sm:$0xff] (!%p2361_p7)  }
  0x21   : > { %s3003_s20 = scalar_lea.vmem %s3268_s6, %s2684_s28  ;;  %s3008_s21 = scalar_lea.vmem %s3270_s8, %s2460_s16  ;;  %2534 = vmatpush3.bf16.msra.mxu0 (!%p2361_p7), %v2730_v0 }
  0x22   : > { %s677_s14 = scalar_lea.vmem %s3271_s9, %s2976_s30  ;;  %s2462_s15 = sshll.u32 %s2976_s30, 6  ;;  %2535 = vmatprep.subr.bf16.mxu0 (!%p2361_p7), %v2847_v1 }
  0x23   : > { %s3018_s12 = scalar_lea.vmem %s3272_s10, %s2462_s15  ;;  %s3023_s28 = scalar_lea.vmem %s3279_s17, %s2360_s19 }
  0x24   : > { %691 = sbr.rel (%p2361_p7) target bundleno = 261 (0x105), region = 92 }
  0x25   : > { %2536 = vmatpush3.bf16.msra.mxu0 (!%p2361_p7), %v2731_v2 }
  0x26   : > { %2537 = vmatprep.subr.bf16.mxu0 (!%p2361_p7), %v2847_v1 }
  0x29   : > { %2538 = vmatpush3.bf16.msra.mxu0 (!%p2361_p7), %v2732_v3 }
  0x2c   : > { %2540 = vmatmul.mubr.msk.bf16.vlgmr.msra.gmra.mrb[0].mxu0 %vm721_vm1, %v694_v6 }
  0xff   : > { %v759_v9 = vpop.f32.mrb[0].mxu0 }
 0x100   : > { %v760_v11 = vadd.f32 %v759_v9, %v701_v8  ;;  %v2541_v12 = vpop.f32.mrb[1].mxu0 }
 0x101   : > { %v762_v13 = vpop.f32.mrb[2].mxu0 }
 0x102   : > { %770 = vst.msk [vmem:[#allocation2 + $0x5] sm:$0xff] %vm769_vm3, %v760_v11  ;;  %v763_v14 = vadd.f32 %v762_v13, %v702_v10  ;;  %v2542_v15 = vpop.f32.mrb[3].mxu0 }
 0x104   : > { %771 = vst.msk [vmem:[#allocation2 + $0xd] sm:$0xff] %vm769_vm3, %v763_v14 }
 0x105 PF: > { %vm776_vm4 = vcmask 261120   ;;  %vm783_vm5 = vcmask 258048   ;;  %v2733_v37 = vld [vmem:[%s2993_s13] sm:$0xff]   ;;  %v2734_v38 = vld [vmem:[%s2993_s13 + $0x8] sm:$0xff]   ;;  %v818_v45 = vlaneseq  ;;  %vm1061_vm6 = vcmask 130048   ;;  %p2450_p8 = scmp.ne.s32.totalorder %s2829_s24, 1 }
 0x106   : > { %2543 = vmatprep.subr.bf16.mxu0 %v2733_v37  ;;  %v2735_v39 = vld [vmem:[%s2993_s13 + $0x20] sm:$0xff]   ;;  %v2736_v6 = vld [vmem:[%s2993_s13 + $0x28] sm:$0xff]   ;;  %vm1167_vm7 = vcmask 1041408   ;;  %vm1168_vm8 = vcmask 1042432   ;;  %vm1122_vm9 = vcmask 171008   ;;  %vm1129_vm10 = vcmask 167936  }
 0x107   : > { %2544 = vmatpush3.bf16.msra.mxu0 %v2733_v37  ;;  %v3065_v50 = vshrl.u32 %v818_v45, 7  ;;  %v3069_v52 = vld [vmem:[%s2985_s27] sm:$0xff]  ;;  %v2738_v8 = vld [vmem:[%s2993_s13 + $0x48] sm:$0xff]   ;;  %vm2041_vm11 = vcmask (!%p2450_p8), 253952   ;;  %s3307_s24 = sld [smem:[#allocation13_spill]] (!%p2450_p8)  ;;  %s3309_s16 = sld [smem:[#allocation15_spill]] (!%p2450_p8) }
 0x108   : > { %2545 = vmatprep.subr.bf16.mxu0 %v2734_v38  ;;  %v2737_v7 = vld [vmem:[%s2993_s13 + $0x40] sm:$0xff]   ;;  %vm2851_vm12 = vmmov (!%p2450_p8), 0   ;;  %s3310_s7 = sld [smem:[#allocation17_spill]] (!%p2450_p8)  ;;  %s3311_s26 = sld [smem:[#allocation16_spill]] (!%p2450_p8) }
 0x109   : > { %v3044_v16 = vld [vmem:[#allocation2] sm:$0xff]  ;;  %v820_v51 = vsub.s32 0, %v3065_v50  ;;  %v827_v54 = vsub.s32 1, %v3065_v50 }
 0x10a   : > { %v777_v19 = vsel %vm776_vm4, %v3044_v16, 0.0  ;;  %v2366_v10 = vld [vmem:[%s3003_s20] ss:$0 sm:$0xff] }
 0x10b   : > { %v3046_v17 = vld [vmem:[#allocation2 + $0x10] sm:$0x1f]  ;;  %v3048_v18 = vld [vmem:[#allocation2 + $0x8] sm:$0xff]  ;;  %778 = vadd.xlane.f32.xlu0 %v777_v19  ;;  %2546 = vmatpush3.bf16.msra.mxu0 %v2734_v38  ;;  %v821_v56 = vrot.slane %v3069_v52, %v820_v51  ;;  %v828_v61 = vrot.slane %v3069_v52, %v827_v54 }
 0x10c   : > { %v784_v20 = vsel %vm783_vm5, %v3046_v17, 0.0  ;;  %v780_v21 = vsel %vm776_vm4, %v3048_v18, 0.0  ;;  %2551 = vmatprep.subr.bf16.mxu0 %v2735_v39 }
 0x10d   : > { %785 = vadd.xlane.f32.xlu1 %v784_v20 }
 0x10f   : > { %781 = vadd.xlane.f32.xlu0 %v780_v21  ;;  %v2376_v21 = vld [vmem:[%s3003_s20 + $0x2] ss:$0 sm:$0xff] }
 0x198   : > { %v779_v22 = vpop.xlane.xlu0 %778 }
 0x199   : > { %v788_v24 = vmul.f32 0.03125, %v779_v22 }
 0x19a   : > { %v786_v23 = vpop.xlane.xlu1 %785 }
 0x19b   : > { %v790_v25 = vmul.f32 0.03125, %v786_v23  ;;  %v791_v26 = vsub.f32 %v3044_v16, %v788_v24 }
 0x19c   : > { %v782_v28 = vpop.xlane.xlu0 %781 }
 0x19d   : > { %v793_v27 = vsub.f32 %v3046_v17, %v790_v25  ;;  %v789_v29 = vmul.f32 0.03125, %v782_v28  ;;  %v794_v30 = vmul.f32 %v791_v26, %v791_v26  ;;  %v2386_v28 = vld [vmem:[%s3003_s20 + $0x4] ss:$0 sm:$0xff] }
 0x19f   : > { %v796_v31 = vmul.f32 %v793_v27, %v793_v27  ;;  %v792_v32 = vsub.f32 %v3048_v18, %v789_v29  ;;  %v797_v33 = vsel %vm776_vm4, %v794_v30, 0.0 }
 0x1a0   : > { %798 = vadd.xlane.f32.xlu1 %v797_v33 }
 0x1a1   : > { %v803_v34 = vsel %vm783_vm5, %v796_v31, 0.0  ;;  %v795_v35 = vmul.f32 %v792_v32, %v792_v32 }
 0x1a3   : > { %v800_v36 = vsel %vm776_vm4, %v795_v35, 0.0  ;;  %v2849_v35 = vmov 65535  }
 0x1a4   : > { %804 = vadd.xlane.f32.xlu1 %v803_v34  ;;  %801 = vadd.xlane.f32.xlu0 %v800_v36  ;;  %v1169_v36 = vsel %vm1167_vm7, 4294967295, %v2849_v35 }
 0x22d   : > { %v799_v40 = vpop.xlane.xlu1 %798 }
 0x22e   : > { %v806_v41 = vmul.f32 0.03125, %v799_v40 }
 0x230   : > { %v809_v42 = vadd.f32 1e-06, %v806_v41 }
 0x231   : > { %v805_v43 = vpop.xlane.xlu1 %804  ;;  %v802_v44 = vpop.xlane.xlu0 %801 }
 0x232   : > { %2757 = vrsqrt.f32 %v809_v42  ;;  %v808_v46 = vmul.f32 0.03125, %v805_v43  ;;  %v807_v47 = vmul.f32 0.03125, %v802_v44  ;;  %v3102_v42 = vsel %vm1168_vm8, %v1169_v36, 0  ;;  %v2739_v44 = vld [vmem:[%s2993_s13 + $0x30] sm:$0xff]  }
 0x234   : > { %v811_v48 = vadd.f32 1e-06, %v808_v46  ;;  %v810_v49 = vadd.f32 1e-06, %v807_v47 }
 0x236   : > { %2759 = vrsqrt.f32 %v811_v48 }
 0x237   : > { %2761 = vrsqrt.f32 %v810_v49  ;;  %v2740_v49 = vld [vmem:[%s2993_s13 + $0x38] sm:$0xff]  }
 0x23c   : > { %v2758_v53 = vpop.eup %2757 }
 0x23d   : > { %v815_v55 = vmul.f32 %v2758_v53, %v791_v26 }
 0x23f   : > { %v822_v60 = vmul.f32 %v821_v56, %v815_v55 }
 0x240   : > { %v2760_v57 = vpop.eup %2759 }
 0x241   : > { %v2762_v58 = vpop.eup %2761  ;;  %v817_v59 = vmul.f32 %v2760_v57, %v793_v27  ;;  %v829_v2 = vadd.f32 %v828_v61, %v822_v60 }
 0x242   : > { %v816_v62 = vmul.f32 %v2762_v58, %v792_v32 }
 0x243   : > { %v824_v63 = vmul.f32 %v821_v56, %v817_v59 }
 0x244   : > { %v823_v0 = vmul.f32 %v821_v56, %v816_v62 }
 0x245   : > { %v831_v1 = vadd.f32 %v828_v61, %v824_v63 }
 0x246   : > { %v830_v3 = vadd.f32 %v828_v61, %v823_v0  ;;  %v2410_v61 = vld [vmem:[%s3003_s20 + $0x3] ss:$0 sm:$0xff] }
 0x247   : > { %v3076_v4 = vpack.c.bf16 %v831_v1, %v831_v1 }
 0x248   : > { %v3078_v5 = vpack.c.bf16 %v830_v3, %v829_v2 }
 0x24a   : > { %2547 = vmatprep.mubr.msk.bf16.mxu0 %vm776_vm4, %v3078_v5 }
 0x24b   : > { %2548 = vmatmul.mubr.msk.bf16.vlgmr.msra.gmra.mrb[0].mxu0 %vm776_vm4, %v3076_v4 }
 0x24c   : > { %2552 = vmatpush3.bf16.msra.mxu0 %v2735_v39  ;;  %2555 = vmatprep.mubr.msk.bf16.mxu0 %vm776_vm4, %v3078_v5 }
 0x24d   : > { %2553 = vmatprep.subr.bf16.mxu0 %v2736_v6 }
 0x250   : > { %2554 = vmatpush3.bf16.msra.mxu0 %v2736_v6 }
 0x251   : > { %2559 = vmatprep.subr.bf16.mxu0 %v2737_v7 }
 0x253   : > { %2556 = vmatmul.mubr.msk.bf16.vlgmr.msra.gmra.mrb[4].mxu0 %vm776_vm4, %v3076_v4 }
 0x254   : > { %2560 = vmatpush3.bf16.msra.mxu0 %v2737_v7  ;;  %2563 = vmatprep.mubr.msk.bf16.mxu0 %vm776_vm4, %v3078_v5 }
 0x255   : > { %2561 = vmatprep.subr.bf16.mxu0 %v2738_v8 }
 0x258   : > { %2562 = vmatpush3.bf16.msra.mxu0 %v2738_v8 }
 0x25b   : > { %2564 = vmatmul.mubr.msk.bf16.vlgmr.msra.gmra.mrb[8].mxu0 %vm776_vm4, %v3076_v4 }
 0x31e   : > { %v2549_v9 = vpop.f32.mrb[0].mxu0 }
 0x31f   : > { %v897_v11 = vpop.f32.mrb[1].mxu0  ;;  %v906_v47 = vadd.f32 %v2549_v9, %v2366_v10 }
 0x320   : > { %v2550_v12 = vpop.f32.mrb[2].mxu0  ;;  %v898_v14 = vadd.f32 %v2366_v10, %v897_v11 }
 0x321   : > { %v900_v13 = vpop.f32.mrb[3].mxu0  ;;  %v1058_v48 = vpack.c.bf16 %v906_v47, %v906_v47 }
 0x322   : > { %v901_v15 = vadd.f32 %v2366_v10, %v900_v13 }
 0x324   : > { %v1057_v19 = vpack.c.bf16 %v901_v15, %v898_v14 }
 0x326   : > { %v2557_v20 = vpop.f32.mrb[4].mxu0  ;;  %2571 = vmatprep.mubr.msk.bf16.mxu1 %vm1061_vm6, %v1057_v19 }
 0x327   : > { %v970_v22 = vpop.f32.mrb[5].mxu0  ;;  %v979_v25 = vadd.f32 %v2557_v20, %v2376_v21 }
 0x328   : > { %v2558_v23 = vpop.f32.mrb[6].mxu0  ;;  %v971_v26 = vadd.f32 %v2376_v21, %v970_v22 }
 0x329   : > { %v973_v24 = vpop.f32.mrb[7].mxu0  ;;  %v1060_v30 = vpack.c.bf16 %v979_v25, %v979_v25 }
 0x32a   : > { %v974_v27 = vadd.f32 %v2376_v21, %v973_v24 }
 0x32b   : > { %v1072_v46 = vsel %vm1061_vm6, %v1060_v30, 0 }
 0x32c   : > { %v1059_v29 = vpack.c.bf16 %v974_v27, %v971_v26 }
 0x32e   : > { %v2565_v31 = vpop.f32.mrb[8].mxu0  ;;  %2679 = vmatprep.subr.msk.bf16.mxu1 %vm1061_vm6, %v1059_v29  ;;  %v1069_v32 = vsel %vm1061_vm6, %v1059_v29, 0 }
 0x32f   : > { %v1052_v33 = vadd.f32 %v2565_v31, %v2386_v28  ;;  %v1043_v34 = vpop.f32.mrb[9].mxu0  ;;  %2568 = vmatpush3.bf16.xpose.msra.mxu1 %v1069_v32 }
 0x330   : > { %v2566_v37 = vpop.f32.mrb[10].mxu0  ;;  %2680 = vmatprep.subr.msk.bf16.mxu1 %vm1061_vm6, %v1060_v30  ;;  %v1044_v40 = vadd.f32 %v2386_v28, %v1043_v34 }
 0x331   : > { %v1046_v38 = vpop.f32.mrb[11].mxu0  ;;  %v1160_v39 = vpack.c.bf16 %v1052_v33, %v1052_v33 }
 0x332   : > { %v1047_v41 = vadd.f32 %v2386_v28, %v1046_v38  ;;  %v2741_v28 = vld [vmem:[%s2993_s13 + $0x10] sm:$0xff]  }
 0x333   : > { %v1172_v45 = vand.u32 %v3102_v42, %v1160_v39 }
 0x334   : > { %v1159_v43 = vpack.c.bf16 %v1047_v41, %v1044_v40  ;;  %v2742_v40 = vld [vmem:[%s2993_s13 + $0x18] sm:$0xff]   ;;  %v2743_v41 = vld [vmem:[%s2993_s13 + $0x50] sm:$0xff]  }
 0x336   : > { %2575 = vmatprep.subr.bf16.mxu0 %v1159_v43 }
 0x337   : > { %2570 = vmatpush3.bf16.xpose.msra.mxu1 %v1072_v46  ;;  %2576 = vmatpush3.bf16.msra.mxu0 %v1159_v43  ;;  %v2744_v43 = vld [vmem:[%s2993_s13 + $0x58] sm:$0xff]   ;;  %s3312_s13 = sld [smem:[#allocation18_spill]] (!%p2450_p8) }
 0x338   : > { %2577 = vmatprep.subr.bf16.mxu0 %v1172_v45  ;;  %2591 = vmatprep.subr.bf16.mxu1 %v2739_v44 }
 0x33b   : > { %2578 = vmatpush3.bf16.msra.mxu0 %v1172_v45 }
 0x33c   : > { %2583 = vmatprep.subr.bf16.mxu0 %v2741_v28 }
 0x33e   : > { %2572 = vmatmul.mubr.msk.bf16.vlgmr.msra.gmra.mrb[0].mxu1 %vm1061_vm6, %v1058_v48 }
 0x33f   : > { %2592 = vmatpush3.bf16.msra.mxu1 %v2739_v44  ;;  %2595 = vmatprep.mubr.msk.bf16.mxu1 %vm776_vm4, %v3078_v5  ;;  %v2745_v44 = vld [vmem:[%s2998_s11] sm:$0xff]  }
 0x340   : > { %2593 = vmatprep.subr.bf16.mxu1 %v2740_v49 }
 0x343   : > { %2594 = vmatpush3.bf16.msra.mxu1 %v2740_v49 }
 0x346   : > { %2596 = vmatmul.mubr.msk.bf16.vlgmr.msra.gmra.mrb[4].mxu1 %vm776_vm4, %v3076_v4 }
 0x411   : > { %v2573_v53 = vpop.f32.mrb[0].mxu1 }
 0x412   : > { %v1108_v54 = vpop.f32.mrb[1].mxu1  ;;  %v1130_v59 = vsel %vm1129_vm10, %v2573_v53, -inf }
 0x413   : > { %v2574_v55 = vpop.f32.mrb[2].mxu1  ;;  %v1123_v56 = vsel %vm1122_vm9, %v1108_v54, -inf }
 0x414   : > { %1124 = vmax.xlane.f32.xlu0 %v1123_v56  ;;  %v1111_v57 = vpop.f32.mrb[3].mxu1 }
 0x415   : > { %v1126_v58 = vsel %vm1122_vm9, %v1111_v57, -inf }
 0x416   : > { %1127 = vmax.xlane.f32.xlu1 %v1126_v58 }
 0x418   : > { %1131 = vmax.xlane.f32.xlu0 %v1130_v59 }
 0x419   : > { %v2597_v60 = vpop.f32.mrb[4].mxu1 }
 0x41a   : > { %v1358_v62 = vpop.f32.mrb[5].mxu1  ;;  %v1367_v1 = vadd.f32 %v2597_v60, %v2410_v61 }
 0x41b   : > { %v2598_v63 = vpop.f32.mrb[6].mxu1  ;;  %v1359_v2 = vadd.f32 %v2410_v61, %v1358_v62 }
 0x41c   : > { %v1361_v0 = vpop.f32.mrb[7].mxu1  ;;  %v1448_v7 = vpack.c.bf16 %v1367_v1, %v1367_v1 }
 0x41d   : > { %v1362_v3 = vadd.f32 %v2410_v61, %v1361_v0  ;;  %v2420_v61 = vld [vmem:[%s3003_s20 + $0x5] ss:$0 sm:$0xff] }
 0x41e   : > { %v1459_v9 = vsel %vm1061_vm6, %v1448_v7, 0 }
 0x41f   : > { %v1447_v6 = vpack.c.bf16 %v1362_v3, %v1359_v2 }
 0x421   : > { %2681 = vmatprep.subr.msk.bf16.mxu1 %vm1061_vm6, %v1447_v6  ;;  %v1456_v8 = vsel %vm1061_vm6, %v1447_v6, 0 }
 0x422   : > { %2608 = vmatpush3.bf16.xpose.msra.mxu1 %v1456_v8 }
 0x423   : > { %2682 = vmatprep.subr.msk.bf16.mxu1 %vm1061_vm6, %v1448_v7 }
 0x42a   : > { %2610 = vmatpush3.bf16.xpose.msra.mxu1 %v1459_v9 }
 0x42b   : > { %2629 = vmatprep.subr.bf16.mxu1 %v2745_v44 }
 0x4a1   : > { %v1125_v10 = vpop.xlane.xlu0 %1124 }
 0x4a2   : > { %v1133_v11 = vsub.f32 %v1108_v54, %v1125_v10  ;;  %v2400_v54 = vld [vmem:[%s3003_s20 + $0x1] ss:$0 sm:$0xff] }
 0x4a3   : > { %v1128_v12 = vpop.xlane.xlu1 %1127 }
 0x4a4   : > { %v1136_v13 = vmul.f32 1.442695, %v1133_v11  ;;  %v1134_v14 = vsub.f32 %v1111_v57, %v1128_v12 }
 0x4a5   : > { %v1132_v15 = vpop.xlane.xlu0 %1131 }
 0x4a6   : > { %2763 = vpow2.f32 %v1136_v13  ;;  %v1138_v19 = vmul.f32 1.442695, %v1134_v14  ;;  %v1135_v20 = vsub.f32 %v2573_v53, %v1132_v15 }
 0x4a8   : > { %2765 = vpow2.f32 %v1138_v19  ;;  %v1140_v21 = vmul.f32 1.442695, %v1135_v20 }
 0x4aa   : > { %2767 = vpow2.f32 %v1140_v21 }
 0x4b0   : > { %v2764_v22 = vpop.eup %2763 }
 0x4b1   : > { %v1142_v23 = vsel %vm1122_vm9, %v2764_v22, 0.0 }
 0x4b2   : > { %v2766_v24 = vpop.eup %2765  ;;  %1143 = vadd.xlane.f32.xlu1 %v1142_v23 }
 0x4b3   : > { %v1145_v25 = vsel %vm1122_vm9, %v2766_v24, 0.0 }
 0x4b4   : > { %v2768_v26 = vpop.eup %2767  ;;  %1146 = vadd.xlane.f32.xlu0 %v1145_v25 }
 0x4b5   : > { %v1148_v27 = vsel %vm1129_vm10, %v2768_v26, 0.0 }
 0x4b6   : > { %1149 = vadd.xlane.f32.xlu1 %v1148_v27 }
 0x53f   : > { %v1144_v29 = vpop.xlane.xlu1 %1143 }
 0x540   : > { %2769 = vrcp.f32 %v1144_v29 }
 0x541   : > { %v1147_v30 = vpop.xlane.xlu0 %1146 }
 0x542   : > { %2771 = vrcp.f32 %v1147_v30 }
 0x543   : > { %v1150_v31 = vpop.xlane.xlu1 %1149 }
 0x544   : > { %2773 = vrcp.f32 %v1150_v31 }
 0x54a   : > { %v2770_v32 = vpop.eup %2769 }
 0x54b   : > { %v1154_v34 = vmul.f32 %v2770_v32, %v2764_v22 }
 0x54c   : > { %v2772_v33 = vpop.eup %2771 }
 0x54d   : > { %v1155_v35 = vmul.f32 %v2772_v33, %v2766_v24 }
 0x54e   : > { %v2774_v36 = vpop.eup %2773 }
 0x54f   : > { %v1156_v37 = vmul.f32 %v2774_v36, %v2768_v26  ;;  %v1157_v38 = vpack.c.bf16 %v1155_v35, %v1154_v34 }
 0x551   : > { %2579 = vmatprep.mubr.msk.bf16.mxu0 %vm1122_vm9, %v1157_v38  ;;  %v1158_v39 = vpack.c.bf16 %v1156_v37, %v1156_v37 }
 0x553   : > { %2580 = vmatmul.mubr.msk.bf16.vlgmr.msra.gmra.mrb[12].mxu0 %vm1122_vm9, %v1158_v39  ;;  %v2746_v39 = vld [vmem:[%s2998_s11 + $0x8] sm:$0xff]  }
 0x554   : > { %2584 = vmatpush3.bf16.msra.mxu0 %v2741_v28  ;;  %2587 = vmatprep.mubr.msk.bf16.mxu0 %vm776_vm4, %v3078_v5 }
 0x555   : > { %2585 = vmatprep.subr.bf16.mxu0 %v2742_v40 }
 0x558   : > { %2586 = vmatpush3.bf16.msra.mxu0 %v2742_v40 }
 0x559   : > { %2599 = vmatprep.subr.bf16.mxu0 %v2743_v41 }
 0x55b   : > { %2588 = vmatmul.mubr.msk.bf16.vlgmr.msra.gmra.mrb[16].mxu0 %vm776_vm4, %v3076_v4 }
 0x55c   : > { %2600 = vmatpush3.bf16.msra.mxu0 %v2743_v41  ;;  %2603 = vmatprep.mubr.msk.bf16.mxu0 %vm776_vm4, %v3078_v5 }
 0x55d   : > { %2601 = vmatprep.subr.bf16.mxu0 %v2744_v43 }
 0x560   : > { %2602 = vmatpush3.bf16.msra.mxu0 %v2744_v43 }
 0x563   : > { %2604 = vmatmul.mubr.msk.bf16.vlgmr.msra.gmra.mrb[20].mxu0 %vm776_vm4, %v3076_v4 }
 0x626   : > { %v2581_v45 = vpop.f32.mrb[12].mxu0 }
 0x627   : > { %v1208_v46 = vpop.f32.mrb[13].mxu0  ;;  %v1223_v9 = vpack.c.bf16 %v2581_v45, %v2581_v45 }
 0x628   : > { %v2582_v47 = vpop.f32.mrb[14].mxu0 }
 0x629   : > { %v1211_v48 = vpop.f32.mrb[15].mxu0 }
 0x62a   : > { %v1222_v49 = vpack.c.bf16 %v1211_v48, %v1208_v46 }
 0x62e   : > { %v2589_v53 = vpop.f32.mrb[16].mxu0 }
 0x62f   : > { %v1285_v55 = vpop.f32.mrb[17].mxu0  ;;  %v1294_v57 = vadd.f32 %v2589_v53, %v2400_v54 }
 0x630   : > { %v2590_v56 = vpop.f32.mrb[18].mxu0  ;;  %v1286_v5 = vadd.f32 %v2400_v54, %v1285_v55 }
 0x631   : > { %v1288_v58 = vpop.f32.mrb[19].mxu0  ;;  %v1446_v62 = vpack.c.bf16 %v1294_v57, %v1294_v57 }
 0x632   : > { %v1289_v59 = vadd.f32 %v2400_v54, %v1288_v58 }
 0x634   : > { %v1445_v60 = vpack.c.bf16 %v1289_v59, %v1286_v5 }
 0x636   : > { %v2605_v4 = vpop.f32.mrb[20].mxu0  ;;  %2611 = vmatprep.mubr.msk.bf16.mxu1 %vm1061_vm6, %v1445_v60  ;;  %v1730_v60 = vsub.s32 2, %v3065_v50 }
 0x637   : > { %v1440_v63 = vadd.f32 %v2605_v4, %v2420_v61  ;;  %v1431_v0 = vpop.f32.mrb[21].mxu0  ;;  %2612 = vmatmul.mubr.msk.bf16.vlgmr.msra.gmra.mrb[8].mxu1 %vm1061_vm6, %v1446_v62 }
 0x638   : > { %v2606_v1 = vpop.f32.mrb[22].mxu0  ;;  %2631 = vmatprep.mubr.msk.bf16.mxu1 %vm1061_vm6, %v1222_v49  ;;  %2630 = vmatpush3.bf16.msra.mxu1 %v2745_v44  ;;  %v1432_v6 = vadd.f32 %v2420_v61, %v1431_v0  ;;  %v1731_v62 = vrot.slane %v3069_v52, %v1730_v60 }
 0x639   : > { %v1434_v2 = vpop.f32.mrb[23].mxu0  ;;  %v1545_v3 = vpack.c.bf16 %v1440_v63, %v1440_v63 }
 0x63a   : > { %v1435_v7 = vadd.f32 %v2420_v61, %v1434_v2  ;;  %v1737_v61 = vsub.s32 3, %v3065_v50 }
 0x63b   : > { %v1553_v10 = vand.u32 %v1545_v3, %v3102_v42 }
 0x63c   : > { %v1544_v8 = vpack.c.bf16 %v1435_v7, %v1432_v6  ;;  %v1738_v1 = vrot.slane %v3069_v52, %v1737_v61 }
 0x63e   : > { %2615 = vmatprep.subr.bf16.mxu0 %v1544_v8 }
 0x63f   : > { %2616 = vmatpush3.bf16.msra.mxu0 %v1544_v8  ;;  %2632 = vmatmul.mubr.msk.bf16.vlgmr.msra.gmra.mrb[12].mxu1 %vm1061_vm6, %v1223_v9 }
 0x640   : > { %2617 = vmatprep.subr.bf16.mxu0 %v1553_v10 }
 0x643   : > { %2618 = vmatpush3.bf16.msra.mxu0 %v1553_v10 }
 0x644   : > { %2623 = vmatprep.subr.bf16.mxu0 %v2746_v39 }
 0x70a   : > { %v2613_v11 = vpop.f32.mrb[8].mxu1 }
 0x70b   : > { %v1495_v12 = vpop.f32.mrb[9].mxu1  ;;  %v1515_v20 = vsel %vm1129_vm10, %v2613_v11, -inf }
 0x70c   : > { %v2614_v13 = vpop.f32.mrb[10].mxu1  ;;  %v1509_v14 = vsel %vm1122_vm9, %v1495_v12, -inf }
 0x70d   : > { %1510 = vmax.xlane.f32.xlu0 %v1509_v14  ;;  %v1498_v15 = vpop.f32.mrb[11].mxu1 }
 0x70e   : > { %v1512_v19 = vsel %vm1122_vm9, %v1498_v15, -inf }
 0x70f   : > { %1513 = vmax.xlane.f32.xlu1 %v1512_v19 }
 0x711   : > { %1516 = vmax.xlane.f32.xlu0 %v1515_v20 }
 0x712   : > { %v2633_v42 = vpop.f32.mrb[12].mxu1 }
 0x713   : > { %v1714_v21 = vpop.f32.mrb[13].mxu1 }
 0x714   : > { %v2634_v22 = vpop.f32.mrb[14].mxu1 }
 0x715   : > { %v1717_v23 = vpop.f32.mrb[15].mxu1 }
 0x79a   : > { %v1511_v24 = vpop.xlane.xlu0 %1510 }
 0x79b   : > { %v1518_v25 = vsub.f32 %v1495_v12, %v1511_v24 }
 0x79c   : > { %v1514_v26 = vpop.xlane.xlu1 %1513 }
 0x79d   : > { %v1521_v27 = vmul.f32 1.442695, %v1518_v25  ;;  %v1519_v28 = vsub.f32 %v1498_v15, %v1514_v26 }
 0x79e   : > { %v1517_v29 = vpop.xlane.xlu0 %1516 }
 0x79f   : > { %2775 = vpow2.f32 %v1521_v27  ;;  %v1523_v30 = vmul.f32 1.442695, %v1519_v28  ;;  %v1520_v31 = vsub.f32 %v2613_v11, %v1517_v29 }
 0x7a1   : > { %2777 = vpow2.f32 %v1523_v30  ;;  %v1525_v32 = vmul.f32 1.442695, %v1520_v31 }
 0x7a3   : > { %2779 = vpow2.f32 %v1525_v32 }
 0x7a9   : > { %v2776_v33 = vpop.eup %2775 }
 0x7aa   : > { %v1527_v34 = vsel %vm1122_vm9, %v2776_v33, 0.0 }
 0x7ab   : > { %v2778_v35 = vpop.eup %2777  ;;  %1528 = vadd.xlane.f32.xlu1 %v1527_v34  ;;  %v2747_v34 = vld [vmem:[%s3008_s21] sm:$0xff]  }
 0x7ac   : > { %v1530_v36 = vsel %vm1122_vm9, %v2778_v35, 0.0 }
 0x7ad   : > { %v2780_v37 = vpop.eup %2779  ;;  %1531 = vadd.xlane.f32.xlu0 %v1530_v36 }
 0x7ae   : > { %v1533_v38 = vsel %vm1129_vm10, %v2780_v37, 0.0 }
 0x7af   : > { %1534 = vadd.xlane.f32.xlu1 %v1533_v38 }
 0x838   : > { %v1529_v40 = vpop.xlane.xlu1 %1528 }
 0x839   : > { %2781 = vrcp.f32 %v1529_v40 }
 0x83a   : > { %v1532_v41 = vpop.xlane.xlu0 %1531 }
 0x83b   : > { %2783 = vrcp.f32 %v1532_v41 }
 0x83c   : > { %v1535_v43 = vpop.xlane.xlu1 %1534 }
 0x83d   : > { %2785 = vrcp.f32 %v1535_v43 }
 0x843   : > { %v2782_v44 = vpop.eup %2781 }
 0x844   : > { %v1539_v46 = vmul.f32 %v2782_v44, %v2776_v33 }
 0x845   : > { %v2784_v45 = vpop.eup %2783 }
 0x846   : > { %v1540_v47 = vmul.f32 %v2784_v45, %v2778_v35  ;;  %v2748_v35 = vld [vmem:[%s3008_s21 + $0x8] sm:$0xff]   ;;  %s3308_s21 = sld [smem:[#allocation14_spill]] (!%p2450_p8) }
 0x847   : > { %v2786_v48 = vpop.eup %2785 }
 0x848   : > { %v1541_v49 = vmul.f32 %v2786_v48, %v2780_v37  ;;  %v1542_v53 = vpack.c.bf16 %v1540_v47, %v1539_v46  ;;  %v1786_v46 = vsub.s32 4, %v3065_v50  ;;  %v1793_v48 = vsub.s32 5, %v3065_v50 }
 0x84a   : > { %2619 = vmatprep.mubr.msk.bf16.mxu0 %vm1122_vm9, %v1542_v53  ;;  %v1543_v54 = vpack.c.bf16 %v1541_v49, %v1541_v49  ;;  %v1787_v47 = vrot.slane %v3069_v52, %v1786_v46 }
 0x84c   : > { %2620 = vmatmul.mubr.msk.bf16.vlgmr.msra.gmra.mrb[24].mxu0 %vm1122_vm9, %v1543_v54 }
 0x84d   : > { %2624 = vmatpush3.bf16.msra.mxu0 %v2746_v39 }
 0x84e   : > { %2635 = vmatprep.subr.bf16.mxu0 %v2747_v34 }
 0x91f   : > { %v2621_v55 = vpop.f32.mrb[24].mxu0 }
 0x920   : > { %v1589_v56 = vpop.f32.mrb[25].mxu0  ;;  %v1604_v59 = vpack.c.bf16 %v2621_v55, %v2621_v55 }
 0x921   : > { %v2622_v57 = vpop.f32.mrb[26].mxu0 }
 0x922   : > { %v1592_v58 = vpop.f32.mrb[27].mxu0  ;;  %v1794_v57 = vrot.slane %v3069_v52, %v1793_v48 }
 0x923   : > { %v1603_v5 = vpack.c.bf16 %v1592_v58, %v1589_v56 }
 0x925   : > { %2625 = vmatprep.mubr.msk.bf16.mxu0 %vm1061_vm6, %v1603_v5 }
 0x926   : > { %2626 = vmatmul.mubr.msk.bf16.vlgmr.msra.gmra.mrb[28].mxu0 %vm1061_vm6, %v1604_v59 }
 0x927   : > { %2636 = vmatpush3.bf16.msra.mxu0 %v2747_v34 }
 0x928   : > { %2637 = vmatprep.subr.bf16.mxu0 %v2748_v35 }
 0x92b   : > { %2638 = vmatpush3.bf16.msra.mxu0 %v2748_v35 }
 0x9f9   : > { %v2627_v4 = vpop.f32.mrb[28].mxu0 }
 0x9fa   : > { %v1723_v63 = vadd.f32 %v2633_v42, %v2627_v4  ;;  %v1654_v0 = vpop.f32.mrb[29].mxu0 }
 0x9fb   : > { %v1715_v2 = vadd.f32 %v1714_v21, %v1654_v0  ;;  %v2628_v3 = vpop.f32.mrb[30].mxu0 }
 0x9fc   : > { %v1734_v6 = vadd.f32 %v1731_v62, %v1723_v63  ;;  %v1657_v7 = vpop.f32.mrb[31].mxu0  ;;  %v2751_v3 = vld [vmem:[%s3018_s12 + $0x10] sm:$0xff]  }
 0x9fd   : > { %v1732_v8 = vadd.f32 %v1731_v62, %v1715_v2  ;;  %v1718_v9 = vadd.f32 %v1717_v23, %v1657_v7  ;;  %v2750_v2 = vld [vmem:[%s3018_s12 + $0x8] sm:$0xff]   ;;  %v2753_v7 = vld [vmem:[%s3018_s12 + $0x20] sm:$0xff]  }
 0x9fe   : > { %v1741_v10 = vmul.f32 %v1738_v1, %v1734_v6  ;;  %v2752_v6 = vld [vmem:[%s3018_s12 + $0x18] sm:$0xff]  }
 0x9ff   : > { %v1739_v11 = vmul.f32 %v1738_v1, %v1732_v8  ;;  %v1733_v12 = vadd.f32 %v1731_v62, %v1718_v9  ;;  %v2754_v8 = vld [vmem:[%s3018_s12 + $0x28] sm:$0xff]   ;;  %v2755_v9 = vld [vmem:[%s3018_s12 + $0x30] sm:$0xff]  }
 0xa00   : > { %v3170_v20 = vadd.f32 %v1741_v10, %v3046_v17  ;;  %v2756_v10 = vld [vmem:[%s3018_s12 + $0x38] sm:$0xff]  }
 0xa01   : > { %v1740_v13 = vmul.f32 %v1738_v1, %v1733_v12  ;;  %v3162_v14 = vadd.f32 %v1739_v11, %v3044_v16  ;;  %v2749_v1 = vld [vmem:[%s3018_s12] sm:$0xff]  }
 0xa02   : > { %v1751_v21 = vsel %vm783_vm5, %v3170_v20, 0.0  ;;  %2643 = vmatprep.subr.bf16.mxu1 %v2749_v1  ;;  %v2437_v11 = vld [vmem:[%s677_s14] ss:$0 sm:$0xff] }
 0xa03   : > { %v1745_v15 = vsel %vm776_vm4, %v3162_v14, 0.0  ;;  %v3167_v19 = vadd.f32 %v1740_v13, %v3048_v18  ;;  %2644 = vmatpush3.bf16.msra.mxu1 %v2749_v1 }
 0xa04   : > { %1746 = vadd.xlane.f32.xlu0 %v1745_v15  ;;  %2645 = vmatprep.subr.bf16.mxu1 %v2750_v2 }
 0xa05   : > { %v1748_v42 = vsel %vm776_vm4, %v3167_v19, 0.0 }
 0xa06   : > { %1749 = vadd.xlane.f32.xlu1 %v1748_v42 }
 0xa07   : > { %2646 = vmatpush3.bf16.msra.mxu1 %v2750_v2 }
 0xa08   : > { %1752 = vadd.xlane.f32.xlu0 %v1751_v21  ;;  %2647 = vmatprep.subr.bf16.mxu1 %v2751_v3 }
 0xa0b   : > { %2648 = vmatpush3.bf16.msra.mxu1 %v2751_v3 }
 0xa0c   : > { %2649 = vmatprep.subr.bf16.mxu1 %v2752_v6 }
 0xa0f   : > { %2650 = vmatpush3.bf16.msra.mxu1 %v2752_v6 }
 0xa10   : > { %2651 = vmatprep.subr.bf16.mxu1 %v2753_v7 }
 0xa13   : > { %2652 = vmatpush3.bf16.msra.mxu1 %v2753_v7 }
 0xa14   : > { %2653 = vmatprep.subr.bf16.mxu1 %v2754_v8 }
 0xa17   : > { %2654 = vmatpush3.bf16.msra.mxu1 %v2754_v8 }
 0xa18   : > { %2655 = vmatprep.subr.bf16.mxu1 %v2755_v9 }
 0xa1b   : > { %2656 = vmatpush3.bf16.msra.mxu1 %v2755_v9 }
 0xa1c   : > { %2657 = vmatprep.subr.bf16.mxu1 %v2756_v10 }
 0xa1f   : > { %2658 = vmatpush3.bf16.msra.mxu1 %v2756_v10 }
 0xa91   : > { %v1747_v16 = vpop.xlane.xlu0 %1746 }
 0xa92   : > { %v1754_v22 = vmul.f32 0.03125, %v1747_v16 }
 0xa93   : > { %v1750_v23 = vpop.xlane.xlu1 %1749 }
 0xa94   : > { %v1757_v24 = vsub.f32 %v3162_v14, %v1754_v22  ;;  %v1755_v18 = vmul.f32 0.03125, %v1750_v23 }
 0xa95   : > { %v1753_v25 = vpop.xlane.xlu0 %1752 }
 0xa96   : > { %v1758_v17 = vsub.f32 %v3167_v19, %v1755_v18  ;;  %v1756_v26 = vmul.f32 0.03125, %v1753_v25  ;;  %v1760_v27 = vmul.f32 %v1757_v24, %v1757_v24 }
 0xa98   : > { %v1759_v28 = vsub.f32 %v3170_v20, %v1756_v26  ;;  %v1763_v29 = vsel %vm776_vm4, %v1760_v27, 0.0  ;;  %v1761_v30 = vmul.f32 %v1758_v17, %v1758_v17 }
 0xa99   : > { %1764 = vadd.xlane.f32.xlu1 %v1763_v29 }
 0xa9a   : > { %v1766_v31 = vsel %vm776_vm4, %v1761_v30, 0.0  ;;  %v1762_v32 = vmul.f32 %v1759_v28, %v1759_v28 }
 0xa9b   : > { %1767 = vadd.xlane.f32.xlu0 %v1766_v31 }
 0xa9c   : > { %v1769_v33 = vsel %vm783_vm5, %v1762_v32, 0.0 }
 0xa9d   : > { %1770 = vadd.xlane.f32.xlu1 %v1769_v33 }
 0xb26   : > { %v1765_v36 = vpop.xlane.xlu1 %1764 }
 0xb27   : > { %v1772_v37 = vmul.f32 0.03125, %v1765_v36 }
 0xb28   : > { %v1768_v38 = vpop.xlane.xlu0 %1767 }
 0xb29   : > { %v1775_v39 = vadd.f32 1e-06, %v1772_v37  ;;  %v1773_v40 = vmul.f32 0.03125, %v1768_v38 }
 0xb2a   : > { %v1771_v41 = vpop.xlane.xlu1 %1770 }
 0xb2b   : > { %2787 = vrsqrt.f32 %v1775_v39  ;;  %v1776_v43 = vadd.f32 1e-06, %v1773_v40  ;;  %v1774_v44 = vmul.f32 0.03125, %v1771_v41 }
 0xb2d   : > { %2789 = vrsqrt.f32 %v1776_v43  ;;  %v1777_v45 = vadd.f32 1e-06, %v1774_v44 }
 0xb2f   : > { %2791 = vrsqrt.f32 %v1777_v45 }
 0xb35   : > { %v2788_v49 = vpop.eup %2787 }
 0xb36   : > { %v1781_v53 = vmul.f32 %v2788_v49, %v1757_v24 }
 0xb37   : > { %v2790_v54 = vpop.eup %2789 }
 0xb38   : > { %v1782_v55 = vmul.f32 %v2790_v54, %v1758_v17  ;;  %v1788_v56 = vmul.f32 %v1787_v47, %v1781_v53  ;;  %v1924_v54 = vsub.s32 6, %v3065_v50 }
 0xb39   : > { %v2792_v58 = vpop.eup %2791 }
 0xb3a   : > { %v1783_v5 = vmul.f32 %v2792_v58, %v1759_v28  ;;  %v1789_v59 = vmul.f32 %v1787_v47, %v1782_v55  ;;  %v1795_v61 = vadd.f32 %v1794_v57, %v1788_v56  ;;  %v2024_v55 = vsub.s32 7, %v3065_v50 }
 0xb3b   : > { %v1925_v56 = vrot.slane %v3069_v52, %v1924_v54 }
 0xb3c   : > { %v1790_v60 = vmul.f32 %v1787_v47, %v1783_v5  ;;  %v1796_v62 = vadd.f32 %v1794_v57, %v1789_v59 }
 0xb3e   : > { %v1798_v4 = vpack.c.bf16 %v1796_v62, %v1795_v61  ;;  %v1797_v63 = vadd.f32 %v1794_v57, %v1790_v60  ;;  %v2025_v57 = vrot.slane %v3069_v52, %v2024_v55 }
 0xb40   : > { %2639 = vmatprep.mubr.msk.bf16.mxu0 %vm776_vm4, %v1798_v4  ;;  %v1799_v0 = vpack.c.bf16 %v1797_v63, %v1797_v63 }
 0xb42   : > { %2640 = vmatmul.mubr.msk.bf16.vlgmr.msra.gmra.mrb[32].mxu0 %vm776_vm4, %v1799_v0 }
 0xc15   : > { %v2641_v12 = vpop.f32.mrb[32].mxu0 }
 0xc16   : > { %v1872_v13 = vadd.f32 %v2641_v12, %v2437_v11  ;;  %v1863_v15 = vpop.f32.mrb[33].mxu0 }
 0xc17   : > { %v1864_v42 = vadd.f32 %v2437_v11, %v1863_v15  ;;  %v2642_v21 = vpop.f32.mrb[34].mxu0 }
 0xc18   : > { %v1882_v16 = vmul.f32 0.044715, %v1872_v13  ;;  %v1866_v22 = vpop.f32.mrb[35].mxu0  ;;  %v1879_v41 = vmul.f32 0.5, %v1872_v13 }
 0xc19   : > { %v1880_v23 = vmul.f32 0.044715, %v1864_v42  ;;  %v1867_v24 = vadd.f32 %v2437_v11, %v1866_v22  ;;  %v1877_v43 = vmul.f32 0.5, %v1864_v42 }
 0xc1a   : > { %v1885_v18 = vmul.f32 %v1882_v16, %v1872_v13 }
 0xc1b   : > { %v1883_v25 = vmul.f32 %v1880_v23, %v1864_v42  ;;  %v1881_v17 = vmul.f32 0.044715, %v1867_v24  ;;  %v1878_v44 = vmul.f32 0.5, %v1867_v24 }
 0xc1c   : > { %v1888_v26 = vmul.f32 %v1885_v18, %v1872_v13 }
 0xc1d   : > { %v1886_v27 = vmul.f32 %v1883_v25, %v1864_v42  ;;  %v1884_v28 = vmul.f32 %v1881_v17, %v1867_v24 }
 0xc1e   : > { %v1891_v29 = vadd.f32 %v1888_v26, %v1872_v13  ;;  %v2039_v13 = vld [vmem:[%s3307_s24] sm:$0x1] (!%p2450_p8) }
 0xc1f   : > { %v1887_v30 = vmul.f32 %v1884_v28, %v1867_v24  ;;  %v1889_v31 = vadd.f32 %v1886_v27, %v1864_v42  ;;  %v2040_v42 = vld [vmem:[%s3308_s21] sm:$0x1] (!%p2450_p8)  ;;  %v2850_v27 = vmov (!%p2450_p8), 0.0   ;;  %v2800_v28 = vld [vmem:[%s3309_s16 + $0x8] sm:$0xff] (!%p2450_p8)  }
 0xc20   : > { %v1894_v32 = vmul.f32 0.7978846, %v1891_v29  ;;  %v2799_v26 = vld [vmem:[%s3309_s16] sm:$0xff] (!%p2450_p8)   ;;  %2663 = vmatprep.subr.bf16.mxu0 (!%p2450_p8), %v2850_v27  ;;  %2667 = vmatprep.mubr.msk.bf16.mxu0 (!%p2450_p8), %vm2851_vm12, %v2850_v27 }
 0xc21   : > { %v1890_v33 = vadd.f32 %v1887_v30, %v1867_v24  ;;  %v1892_v34 = vmul.f32 0.7978846, %v1889_v31  ;;  %2664 = vmatpush3.bf16.msra.mxu0 (!%p2450_p8), %v2799_v26  ;;  %2671 = vmatprep.subr.bf16.mxu1 (!%p2450_p8), %v2850_v27 }
 0xc22   : > { %2793 = vtanh.f32 %v1894_v32  ;;  %2665 = vmatprep.subr.bf16.mxu0 (!%p2450_p8), %v2850_v27 }
 0xc23   : > { %v1893_v35 = vmul.f32 0.7978846, %v1890_v33  ;;  %2795 = vtanh.f32 %v1892_v34 }
 0xc25   : > { %2797 = vtanh.f32 %v1893_v35  ;;  %2666 = vmatpush3.bf16.msra.mxu0 (!%p2450_p8), %v2800_v28 }
 0xc2c   : > { %v2794_v36 = vpop.eup %2793 }
 0xc2d   : > { %v2796_v37 = vpop.eup %2795  ;;  %v1900_v38 = vadd.f32 1.0, %v2794_v36 }
 0xc2e   : > { %v1898_v39 = vadd.f32 1.0, %v2796_v37  ;;  %v2801_v37 = vld [vmem:[%s3310_s7] sm:$0xff] (!%p2450_p8)  }
 0xc2f   : > { %v2798_v40 = vpop.eup %2797  ;;  %v1903_v46 = vmul.f32 %v1900_v38, %v1879_v41  ;;  %v2802_v38 = vld [vmem:[%s3310_s7 + $0x8] sm:$0xff] (!%p2450_p8)  }
 0xc30   : > { %v1899_v45 = vadd.f32 1.0, %v2798_v40  ;;  %v1901_v47 = vmul.f32 %v1898_v39, %v1877_v43  ;;  %v2077_v39 = vld [vmem:[%s3311_s26] sm:$0x1] (!%p2450_p8) }
 0xc31   : > { %v1905_v53 = vpack.c.bf16 %v1903_v46, %v1903_v46 }
 0xc32   : > { %v1902_v48 = vmul.f32 %v1899_v45, %v1878_v44 }
 0xc34   : > { %v1904_v49 = vpack.c.bf16 %v1902_v48, %v1901_v47  ;;  %v2139_v48 = vld [vmem:[%s3312_s13] sm:$0x1] (!%p2450_p8) }
 0xc36   : > { %2659 = vmatprep.mubr.bf16.mxu1 %v1904_v49 }
 0xc37   : > { %2660 = vmatmul.mubr.bf16.vlgmr.msra.gmra.mrb[16].mxu1 %v1905_v53 }
 0xc38   : > { %2675 = vmatprep.mubr.msk.bf16.mxu1 (!%p2450_p8), %vm2851_vm12, %v2850_v27  ;;  %2672 = vmatpush3.bf16.msra.mxu1 (!%p2450_p8), %v2801_v37 }
 0xc39   : > { %2673 = vmatprep.subr.bf16.mxu1 (!%p2450_p8), %v2850_v27 }
 0xc3c   : > { %2674 = vmatpush3.bf16.msra.mxu1 (!%p2450_p8), %v2802_v38 }
 0xd0a   : > { %v2661_v58 = vpop.f32.mrb[16].mxu1 }
 0xd0b   : > { %v2017_v5 = vadd.f32 %v2661_v58, %v1925_v56  ;;  %v2008_v59 = vpop.f32.mrb[17].mxu1 }
 0xd0c   : > { %v2009_v60 = vadd.f32 %v2008_v59, %v1925_v56  ;;  %v2662_v61 = vpop.f32.mrb[18].mxu1 }
 0xd0d   : > { %v2028_v62 = vmul.f32 %v2025_v57, %v2017_v5  ;;  %v2011_v4 = vpop.f32.mrb[19].mxu1 }
 0xd0e   : > { %v2026_v63 = vmul.f32 %v2025_v57, %v2009_v60  ;;  %v2012_v0 = vadd.f32 %v2011_v4, %v1925_v56  ;;  %2038 = sbr.rel (%p2450_p8) target bundleno = 4409 (0x1139), region = 96 }
 0xd0f   : > { %v2031_v1 = vadd.f32 %v2028_v62, %v3170_v20 }
 0xd10   : > { %v2029_v2 = vadd.f32 %v2026_v63, %v3162_v14  ;;  %v2027_v3 = vmul.f32 %v2025_v57, %v2012_v0 }
 0xd11   : > { %2034 = vst.msk [vmem:[#allocation2 + $0x10] sm:$0x1f] %vm783_vm5, %v2031_v1 }
 0xd12   : > { %2032 = vst.msk [vmem:[#allocation2] sm:$0xff] %vm776_vm4, %v2029_v2  ;;  %v2030_v52 = vadd.f32 %v2027_v3, %v3167_v19  ;;  %v2042_v6 = vsel (!%p2450_p8), %vm2041_vm11, %v2029_v2, 0.0 }
 0xd13   : > { %2043 = vadd.xlane.f32.xlu0 (!%p2450_p8), %v2042_v6 }
 0xd14   : > { %2033 = vst.msk [vmem:[#allocation2 + $0x8] sm:$0xff] %vm776_vm4, %v2030_v52 }
 0xda0   : > { %v2044_v7 = vpop.xlane.xlu0 %2043 }
 0xda1   : > { %v2045_v20 = vmul.f32 0.03125, %v2044_v7 }
 0xda3   : > { %v2046_v8 = vsub.f32 %v2029_v2, %v2045_v20 }
 0xda5   : > { %v2047_v14 = vmul.f32 %v2046_v8, %v2046_v8 }
 0xda7   : > { %v2048_v9 = vsel %vm2041_vm11, %v2047_v14, 0.0 }
 0xda8   : > { %2049 = vadd.xlane.f32.xlu0 %v2048_v9 }
 0xe35   : > { %v2050_v10 = vpop.xlane.xlu0 %2049 }
 0xe36   : > { %v2051_v11 = vmul.f32 0.03125, %v2050_v10 }
 0xe38   : > { %v2052_v12 = vadd.f32 1e-06, %v2051_v11 }
 0xe3a   : > { %2803 = vrsqrt.f32 %v2052_v12 }
 0xe44   : > { %v2804_v19 = vpop.eup %2803 }
 0xe45   : > { %v2054_v15 = vmul.f32 %v2804_v19, %v2046_v8 }
 0xe47   : > { %v2055_v21 = vmul.f32 %v2054_v15, %v2039_v13 }
 0xe49   : > { %v2056_v16 = vadd.f32 %v2055_v21, %v2040_v42 }
 0xe4b   : > { %v2057_v22 = vsel %vm2041_vm11, %v2056_v16, 0.0 }
 0xe4c   : > { %2058 = vadd.xlane.f32.xlu1 %v2057_v22 }
 0xed9   : > { %v2059_v23 = vpop.xlane.xlu1 %2058 }
 0xeda   : > { %v2060_v24 = vmul.f32 0.03125, %v2059_v23 }
 0xedc   : > { %v2061_v18 = vsub.f32 %v2056_v16, %v2060_v24 }
 0xede   : > { %v2062_v25 = vmul.f32 %v2061_v18, %v2061_v18 }
 0xee0   : > { %v2063_v17 = vsel %vm2041_vm11, %v2062_v25, 0.0 }
 0xee1   : > { %2064 = vadd.xlane.f32.xlu1 %v2063_v17 }
 0xf6e   : > { %v2065_v29 = vpop.xlane.xlu1 %2064 }
 0xf6f   : > { %v2066_v30 = vmul.f32 0.03125, %v2065_v29 }
 0xf71   : > { %v2067_v31 = vadd.f32 1e-06, %v2066_v30 }
 0xf73   : > { %2805 = vrsqrt.f32 %v2067_v31 }
 0xf7d   : > { %v2806_v32 = vpop.eup %2805 }
 0xf7e   : > { %v2069_v33 = vmul.f32 %v2806_v32, %v2061_v18 }
 0xf80   : > { %v2070_v34 = vmul.f32 %v2069_v33, %v2039_v13 }
 0xf82   : > { %v2071_v35 = vadd.f32 %v2070_v34, %v2040_v42 }
 0xf84   : > { %v2072_v36 = vpack.c.bf16 %v2071_v35, %v2071_v35 }
 0xf86   : > { %2668 = vmatmul.mubr.msk.bf16.vlgmr.msra.gmra.mrb[0].mxu0 %vm776_vm4, %v2072_v36 }
0x1059   : > { %v2127_v40 = vpop.f32.mrb[0].mxu0 }
0x105a   : > { %v2128_v41 = vadd.f32 %v2127_v40, %v2077_v39  ;;  %v2669_v43 = vpop.f32.mrb[1].mxu0 }
0x105b   : > { %v2130_v44 = vpop.f32.mrb[2].mxu0 }
0x105c   : > { %v2133_v45 = vmax.f32 %v2128_v41, 0.0  ;;  %v2670_v46 = vpop.f32.mrb[3].mxu0 }
0x105e   : > { %v2134_v47 = vpack.c.bf16 %v2133_v45, %v2133_v45 }
0x1060   : > { %2676 = vmatmul.mubr.msk.bf16.vlgmr.msra.gmra.mrb[0].mxu1 %vm776_vm4, %v2134_v47 }
0x1133   : > { %v2189_v49 = vpop.f32.mrb[0].mxu1 }
0x1134   : > { %v2190_v53 = vadd.f32 %v2189_v49, %v2139_v48  ;;  %v2677_v54 = vpop.f32.mrb[1].mxu1 }
0x1135   : > { %v2192_v55 = vpop.f32.mrb[2].mxu1 }
0x1136   : > { %v2198_v56 = vrot.slane %v2190_v53, %v820_v51  ;;  %v2678_v57 = vpop.f32.mrb[3].mxu1 }
0x1138   : > { %2199 = vst [vmem:[%s3023_s28] sm:$0xff] %v2198_v56 }
0x1139 PF: > { %s3313_s27 = sld [smem:[#allocation5_spill]]  ;;  %s3314_s24 = sld [smem:[#allocation3_spill]] }
0x113a   : > { %s3315_s25 = sld [smem:[#allocation4_spill]]  ;;  %s3316_s26 = sld [smem:[#allocation6_spill]] }
0x113f   : > { %s27_s28 = sadd.s32 1, %s3313_s27   ;;  %s3317_s27 = sld [smem:[#allocation7_spill]] }
0x1140   : > { %p24_p9 = scmp.ge.s32.totalorder %s27_s28, 6  }
0x1142   :  { %26 = sbr.rel (!%p24_p9) target bundleno = 12 (0xc), region = 158 }

</bundles_post_ra>
